<compile_context>
chip_gen: v7x
topology: tpu7x:2x2x1
jax: 0.10.0
libtpu: 0.0.40
codegen_flags: <defaults>
</compile_context>

<pallas_src>
import functools
import math

import numpy as np
import jax
import jax.numpy as jnp
from jax.experimental import pallas as pl
from jax.experimental.pallas import tpu as pltpu

# ----------------------------- model configuration -----------------------------
B = 2               # batch
SEQ = 16            # N frames (PyTorch hardcodes 300; any N works identically)
V = 25              # joints (type_embedding has 25 rows)
C = 3               # state_dim (x, y, acc)
INPUT_DIM = 16      # input_dim (must be even)
IH = INPUT_DIM // 2 # half: state-embedding / type-embedding width
D = 32              # output_dim (transformer model dim)
HEAD_DIM = 16
HEAD_NUM = 2
HHD = HEAD_NUM * HEAD_DIM
HIDDEN = 32         # hidden_dim of transformer MLP (mlp_num = 2)
LAYER_NUM = 2
DEC_DIM = 60        # decoder output (hardcoded 60 in the module)
LANE = 128
# dropout_ratio = 0.0 -> dropout is identity and is omitted.


# ------------------------------- small helpers ----------------------------------
def _layernorm(x, g, b, eps=1e-5):
    mu = jnp.mean(x, axis=-1, keepdims=True)
    var = jnp.mean(jnp.square(x - mu), axis=-1, keepdims=True)
    return (x - mu) * jax.lax.rsqrt(var + eps) * g + b


def _round_up(a, m):
    return ((a + m - 1) // m) * m


def _pack_params(pdict):
    """Pack 2D params into one (rows, 128) f32 buffer, 8-row / 128-lane padded."""
    blocks, offsets, row = [], {}, 0
    for name, a in pdict.items():
        a = jnp.asarray(a, jnp.float32)
        nr, nc = a.shape
        assert nc <= LANE
        nr_pad = _round_up(nr, 8)
        blocks.append(jnp.zeros((nr_pad, LANE), jnp.float32).at[:nr, :nc].set(a))
        offsets[name] = (row, nr, nc)
        row += nr_pad
    return jnp.concatenate(blocks, axis=0), offsets


def _num_grid_steps(batch, n_frames):
    """Split across the 2 TensorCores only when the chip has 2 TCs AND the
    per-step work is big enough to amortize the duplicated weight/pool DMA."""
    try:
        kind = jax.devices()[0].device_kind.lower()
    except Exception:
        kind = ""
    two_tc = any(t in kind for t in ("v7", "7x", "v4", "v5p"))
    if two_tc and batch >= 2 and batch % 2 == 0 and n_frames >= 128:
        return 2
    return 1


# ------------------------------ parameter init -----------------------------------
def init_params(key):
    ks = jax.random.split(key, 16)

    def w(k, shape, scale=0.05):
        return (scale * jax.random.normal(k, shape)).astype(jnp.float32)

    hhd3 = 3 * HHD
    return {
        "type_table": w(ks[0], (V, IH)),
        "state_W": w(ks[1], (C, IH)),
        "state_b": w(ks[2], (1, IH)),
        "emb_W": w(ks[3], (INPUT_DIM, D)),
        "emb_b": w(ks[4], (1, D)),
        "pre_W": w(ks[5], (LAYER_NUM, D, hhd3)),
        "pre_b": w(ks[6], (LAYER_NUM, 1, hhd3)),
        "proj_W": w(ks[7], (LAYER_NUM, HHD, D)),
        "proj_b": w(ks[8], (LAYER_NUM, 1, D)),
        "ln1_g": jnp.ones((LAYER_NUM, 1, D), jnp.float32),
        "ln1_b": jnp.zeros((LAYER_NUM, 1, D), jnp.float32),
        "mlp1_W": w(ks[9], (LAYER_NUM, D, HIDDEN)),
        "mlp1_b": w(ks[10], (LAYER_NUM, 1, HIDDEN)),
        "mlp2_W": w(ks[11], (LAYER_NUM, HIDDEN, D)),
        "mlp2_b": w(ks[12], (LAYER_NUM, 1, D)),
        "ln2_g": jnp.ones((LAYER_NUM, 1, D), jnp.float32),
        "ln2_b": jnp.zeros((LAYER_NUM, 1, D), jnp.float32),
        "dec_W": w(ks[13], (D, DEC_DIM)),
        "dec_b": w(ks[14], (1, DEC_DIM)),
    }


# ---------------------------- one-time preparation -------------------------------
def prepare_params(params, *, n_frames, batch):
    """Hoisted, one-time parameter prep (folding / padding / packing)."""
    num_steps = _num_grid_steps(batch, n_frames)
    assert batch % num_steps == 0
    G = batch // num_steps
    N = n_frames
    GN = G * N
    S_TOT = HEAD_NUM * GN                       # rows of the stacked attention
    SLAB = 2 * N * V                            # joint rows per batch element
    SLAB_PAD = _round_up(SLAB, LANE)            # lane-aligned per-group slab

    # Fold 1/sqrt(head_dim) into the Q columns of attention_pre.
    scale = 1.0 / math.sqrt(HEAD_DIM)
    pre_W = params["pre_W"].at[:, :, :HHD].multiply(scale)
    pre_b = params["pre_b"].at[:, :, :HHD].multiply(scale)

    # Constant type-embedding contribution folded into one bias; the 1/V
    # joint-mean is folded into the state half of the embedding weight so the
    # pooling matrix can use plain 1.0 entries (exact).
    type_mean = jnp.mean(params["type_table"], axis=0, keepdims=True)            # (1, IH)
    const_b = 2.0 * type_mean @ params["emb_W"][IH:, :] + params["emb_b"]        # (1, D)
    emb_Ws = params["emb_W"][:IH, :] / float(V)                                  # (IH, D)

    dec_Wp = jnp.zeros((D, LANE), jnp.float32).at[:, :DEC_DIM].set(params["dec_W"])
    dec_bp = jnp.zeros((1, LANE), jnp.float32).at[:, :DEC_DIM].set(params["dec_b"])

    # Additive block mask for the stacked attention: rows i and j may attend
    # iff they belong to the same (head, batch-group) block of N frames.
    blk = np.arange(S_TOT) // N
    attn_mask = np.where(blk[:, None] == blk[None, :], 0.0, -1e9).astype(np.float32)

    def bc(b2d, rows):  # pre-broadcast 1-row params -> tile-aligned in-kernel adds
        b2d = jnp.asarray(b2d, jnp.float32).reshape(1, -1)
        return jnp.broadcast_to(b2d, (rows, b2d.shape[-1]))

    pdict = {
        "state_WT": params["state_W"].T,        # (IH, C)
        "state_bT": params["state_b"].T,        # (IH, 1)
        "emb_Ws": emb_Ws,                       # (IH, D)
        "const_b": bc(const_b, GN),             # (GN, D)
        "attn_mask": jnp.asarray(attn_mask),    # (S_TOT, S_TOT)
        "dec_W": dec_Wp,                        # (D, 128)
        "dec_b": bc(dec_bp, G),                 # (G, 128)
    }
    for l in range(LAYER_NUM):
        pdict[f"pre_W_{l}"] = pre_W[l]
        pdict[f"pre_b_{l}"] = bc(pre_b[l], GN)
        pdict[f"proj_W_{l}"] = params["proj_W"][l]
        pdict[f"proj_b_{l}"] = bc(params["proj_b"][l], GN)
        pdict[f"ln1_g_{l}"] = bc(params["ln1_g"][l], GN)
        pdict[f"ln1_b_{l}"] = bc(params["ln1_b"][l], GN)
        pdict[f"mlp1_W_{l}"] = params["mlp1_W"][l]
        pdict[f"mlp1_b_{l}"] = bc(params["mlp1_b"][l], GN)
        pdict[f"mlp2_W_{l}"] = params["mlp2_W"][l]
        pdict[f"mlp2_b_{l}"] = bc(params["mlp2_b"][l], GN)
        pdict[f"ln2_g_{l}"] = bc(params["ln2_g"][l], GN)
        pdict[f"ln2_b_{l}"] = bc(params["ln2_b"][l], GN)
    packed, offs = _pack_params(pdict)

    # Per-group joint-mean + person-sum pooling matrix with 1.0 entries
    # (the 1/V is in emb_Ws); zero columns cover the lane padding of the slab.
    pg = np.zeros((N, SLAB_PAD), np.float32)
    for n in range(N):
        pg[n, n * V:(n + 1) * V] = 1.0                       # person A, frame n
        pg[n, N * V + n * V:N * V + (n + 1) * V] = 1.0       # person B, frame n
    pool_g = jnp.asarray(pg)                                  # (N, SLAB_PAD)

    cfg = dict(num_steps=num_steps, G=G, N=N, GN=GN, S_TOT=S_TOT,
               SLAB_PAD=SLAB_PAD, offs=offs)
    return packed, pool_g, cfg


# -------------------------------- forward / kernel --------------------------------
def ar_model_forward(x, packed, pool_g, cfg, mask=None):
    # TODO(synk): attention-mask path (mask is not None) is not implemented; the
    #             reference module is exercised with mask=None here.
    assert mask is None
    num_steps, G, N = cfg["num_steps"], cfg["G"], cfg["N"]
    GN, SLAB_PAD = cfg["GN"], cfg["SLAB_PAD"]
    offs = cfg["offs"]

    Bx, Nx, Vx, Cx, M = x.shape
    assert (Nx, Vx, Cx, M) == (N, V, C, 2) and Bx == num_steps * G

    # Lane-dense, transposed activation layout: (steps, C, G*SLAB_PAD) with the
    # joint rows ordered (group, person, frame, joint) along the lane axis.
    x = x.astype(jnp.float32)
    ent = jnp.transpose(x, (0, 3, 4, 1, 2)).reshape(Bx, C, 2 * N * V)
    pad = SLAB_PAD - 2 * N * V
    if pad:
        ent = jnp.pad(ent, ((0, 0), (0, 0), (0, pad)))
    ent = ent.reshape(num_steps, G, C, SLAB_PAD).transpose(0, 2, 1, 3)
    ent = ent.reshape(num_steps, C, G * SLAB_PAD)

    def kernel(ent_ref, pool_ref, p_ref, out_ref):
        def P(name):
            r, nr, nc = offs[name]
            return p_ref[r:r + nr, :nc]

        ent_t = ent_ref[0]                                       # (C, G*SLAB_PAD)

        # state_embedding (Linear + ReLU), computed transposed / lane-dense.
        se_t = jnp.maximum(
            jnp.dot(P("state_WT"), ent_t, preferred_element_type=jnp.float32)
            + P("state_bT"), 0.0)                                # (IH, G*SLAB_PAD)

        # joint-mean + person-sum pooling: one NT matmul per batch group.
        pool = pool_ref[...]                                     # (N, SLAB_PAD)
        pooled_parts = []
        for g in range(G):
            seg = se_t[:, g * SLAB_PAD:(g + 1) * SLAB_PAD]       # 128-aligned slice
            pooled_parts.append(
                jax.lax.dot_general(pool, seg, (((1,), (1,)), ((), ())),
                                    preferred_element_type=jnp.float32))  # (N, IH)
        pooled = (jnp.concatenate(pooled_parts, axis=0) if G > 1
                  else pooled_parts[0])                          # (GN, IH)

        # embedding (Linear + ReLU); 1/V and the type-embedding term are folded.
        h = jnp.maximum(
            jnp.dot(pooled, P("emb_Ws"), preferred_element_type=jnp.float32)
            + P("const_b"), 0.0)                                 # (GN, D)

        attn_mask = P("attn_mask")                               # (S_TOT, S_TOT)

        # Transformer layers (post-norm): x = LN1(x + attn(x)); x = LN2(x + mlp(x))
        for l in range(LAYER_NUM):
            qkv = (jnp.dot(h, P(f"pre_W_{l}"), preferred_element_type=jnp.float32)
                   + P(f"pre_b_{l}"))                            # (GN, 3*HHD), Q pre-scaled

            def stack(base):
                parts = [qkv[:, base + hd * HEAD_DIM: base + (hd + 1) * HEAD_DIM]
                         for hd in range(HEAD_NUM)]
                return jnp.concatenate(parts, axis=0) if HEAD_NUM > 1 else parts[0]

            q_s, k_s, v_s = stack(0), stack(HHD), stack(2 * HHD)  # (S_TOT, HEAD_DIM)

            # single block-diagonal attention over all (head, group) blocks
            s = jax.lax.dot_general(q_s, k_s, (((1,), (1,)), ((), ())),
                                    preferred_element_type=jnp.float32)  # (S_TOT, S_TOT)
            s = s + attn_mask
            s = s - jnp.max(s, axis=-1, keepdims=True)
            p = jnp.exp(s)
            p = p * pl.reciprocal(jnp.sum(p, axis=-1, keepdims=True), approx=True)
            av = jnp.dot(p, v_s, preferred_element_type=jnp.float32)     # (S_TOT, HEAD_DIM)

            att = (jnp.concatenate([av[hd * GN:(hd + 1) * GN, :]
                                    for hd in range(HEAD_NUM)], axis=1)
                   if HEAD_NUM > 1 else av)                      # (GN, HHD)
            a = (jnp.dot(att, P(f"proj_W_{l}"), preferred_element_type=jnp.float32)
                 + P(f"proj_b_{l}"))

            h = _layernorm(h + a, P(f"ln1_g_{l}"), P(f"ln1_b_{l}"))
            m = jnp.maximum(
                jnp.dot(h, P(f"mlp1_W_{l}"), preferred_element_type=jnp.float32)
                + P(f"mlp1_b_{l}"), 0.0)
            m = jnp.maximum(
                jnp.dot(m, P(f"mlp2_W_{l}"), preferred_element_type=jnp.float32)
                + P(f"mlp2_b_{l}"), 0.0)
            h = _layernorm(h + m, P(f"ln2_g_{l}"), P(f"ln2_b_{l}"))

        # mean over frames per batch element, then decoder (Linear + ReLU),
        # written lane-dense (128 wide, zero padded).
        if G > 1:
            hm = jnp.concatenate(
                [jnp.mean(h[g * N:(g + 1) * N, :], axis=0, keepdims=True)
                 for g in range(G)], axis=0)                     # (G, D)
        else:
            hm = jnp.mean(h, axis=0, keepdims=True)
        logits = jnp.maximum(
            jnp.dot(hm, P("dec_W"), preferred_element_type=jnp.float32)
            + P("dec_b"), 0.0)
        out_ref[0] = logits                                      # (G, 128)

    out = pl.pallas_call(
        kernel,
        grid=(num_steps,),
        in_specs=[
            pl.BlockSpec((1, C, G * SLAB_PAD), lambda s: (s, 0, 0)),
            pl.BlockSpec(pool_g.shape, lambda s: (0, 0)),
            pl.BlockSpec(packed.shape, lambda s: (0, 0)),
        ],
        out_specs=pl.BlockSpec((1, G, LANE), lambda s: (s, 0, 0)),
        out_shape=jax.ShapeDtypeStruct((num_steps, G, LANE), jnp.float32),
        compiler_params=pltpu.CompilerParams(dimension_semantics=("parallel",)),
    )(ent, pool_g, packed)

    return out.reshape(Bx, LANE)[:, :DEC_DIM]


if __name__ == "__main__":
    key = jax.random.PRNGKey(0)
    kx, kp = jax.random.split(key)
    x = jax.random.normal(kx, (B, SEQ, V, C, 2), dtype=jnp.float32)
    params = init_params(kp)

    # One-time preparation (hoisted out of the per-call hot path), then jit the
    # thin activation wrapper + kernel launch.
    packed, pool_g, cfg = prepare_params(params, n_frames=SEQ, batch=B)
    fwd = jax.jit(lambda xx, pk, pg: ar_model_forward(xx, pk, pg, cfg))

    logits = fwd(x, packed, pool_g)
    jax.block_until_ready(logits)
    assert logits.shape == (B, DEC_DIM)
    assert bool(jnp.all(jnp.isfinite(logits)))
    print("KERNEL_OK")
</pallas_src>

<mosaic_0001>
module attributes {stable_mosaic.version = 11 : i64} {
  func.func @kernel(%arg0: i32, %arg1: memref<1x3x1792xf32, #tpu.memory_space<vmem>>, %arg2: memref<16x896xf32, #tpu.memory_space<vmem>>, %arg3: memref<928x128xf32, #tpu.memory_space<vmem>>, %arg4: memref<1x2x128xf32, #tpu.memory_space<vmem>>) attributes {dimension_semantics = [#tpu.dimension_semantics<parallel>], iteration_bounds = array<i64: 1>, scalar_prefetch = 0 : i64, scratch_operands = 0 : i64, tpu.core_type = #tpu.core_type<tc>, window_params = [{transform_indices = @transform_0, window_bounds = array<i64: 1, 3, 1792>}, {pipeline_mode = #tpu.pipeline_mode<synchronous>, transform_indices = @transform_1, window_bounds = array<i64: 16, 896>}, {pipeline_mode = #tpu.pipeline_mode<synchronous>, transform_indices = @transform_2, window_bounds = array<i64: 928, 128>}, {transform_indices = @transform_3, window_bounds = array<i64: 1, 2, 128>}]} {
    %c0 = arith.constant 0 : index
    %c0_0 = arith.constant 0 : index
    %c0_1 = arith.constant 0 : index
    %0 = vector.load %arg1[%c0, %c0_0, %c0_1] : memref<1x3x1792xf32, #tpu.memory_space<vmem>>, vector<1x3x1792xf32>
    %1 = vector.shape_cast %0 : vector<1x3x1792xf32> to vector<3x1792xf32>
    %c0_2 = arith.constant 0 : index
    %c0_3 = arith.constant 0 : index
    %2 = vector.load %arg3[%c0_2, %c0_3] : memref<928x128xf32, #tpu.memory_space<vmem>>, vector<8x3xf32>
    %cst = arith.constant dense<0.000000e+00> : vector<8x1792xf32>
    %3 = tpu.matmul %2, %1, %cst {dimension_numbers = #tpu.dot_dimension_numbers<[1], [0], [0], [1], [0, 0, 1, 1], [], []>} : vector<8x3xf32>, vector<3x1792xf32>, vector<8x1792xf32> -> vector<8x1792xf32>
    %c8 = arith.constant 8 : index
    %c0_4 = arith.constant 0 : index
    %4 = vector.load %arg3[%c8, %c0_4] : memref<928x128xf32, #tpu.memory_space<vmem>>, vector<8x1xf32>
    %5 = vector.broadcast %4 : vector<8x1xf32> to vector<8x1792xf32>
    %6 = arith.addf %3, %5 : vector<8x1792xf32>
    %cst_5 = arith.constant 0.000000e+00 : f32
    %7 = vector.broadcast %cst_5 : f32 to vector<8x1792xf32>
    %8 = arith.maximumf %6, %7 : vector<8x1792xf32>
    %c0_6 = arith.constant 0 : index
    %c0_7 = arith.constant 0 : index
    %9 = vector.load %arg2[%c0_6, %c0_7] : memref<16x896xf32, #tpu.memory_space<vmem>>, vector<16x896xf32>
    %10 = vector.extract_strided_slice %8 {offsets = [0, 0], sizes = [8, 896], strides = [1, 1]} : vector<8x1792xf32> to vector<8x896xf32>
    %cst_8 = arith.constant dense<0.000000e+00> : vector<16x8xf32>
    %11 = tpu.matmul %9, %10, %cst_8 {dimension_numbers = #tpu.dot_dimension_numbers<[1], [1], [0], [0], [0, 0, 1, 0], [], []>} : vector<16x896xf32>, vector<8x896xf32>, vector<16x8xf32> -> vector<16x8xf32>
    %12 = vector.extract_strided_slice %8 {offsets = [0, 896], sizes = [8, 896], strides = [1, 1]} : vector<8x1792xf32> to vector<8x896xf32>
    %cst_9 = arith.constant dense<0.000000e+00> : vector<16x8xf32>
    %13 = tpu.matmul %9, %12, %cst_9 {dimension_numbers = #tpu.dot_dimension_numbers<[1], [1], [0], [0], [0, 0, 1, 0], [], []>} : vector<16x896xf32>, vector<8x896xf32>, vector<16x8xf32> -> vector<16x8xf32>
    %14 = tpu.concatenate %11, %13 in 0 : vector<16x8xf32>, vector<16x8xf32> -> vector<32x8xf32>
    %c16 = arith.constant 16 : index
    %c0_10 = arith.constant 0 : index
    %15 = vector.load %arg3[%c16, %c0_10] : memref<928x128xf32, #tpu.memory_space<vmem>>, vector<8x32xf32>
    %cst_11 = arith.constant dense<0.000000e+00> : vector<32x32xf32>
    %16 = tpu.matmul %14, %15, %cst_11 {dimension_numbers = #tpu.dot_dimension_numbers<[1], [0], [0], [1], [0, 0, 1, 1], [], []>} : vector<32x8xf32>, vector<8x32xf32>, vector<32x32xf32> -> vector<32x32xf32>
    %c24 = arith.constant 24 : index
    %c0_12 = arith.constant 0 : index
    %17 = vector.load %arg3[%c24, %c0_12] : memref<928x128xf32, #tpu.memory_space<vmem>>, vector<32x32xf32>
    %18 = arith.addf %16, %17 : vector<32x32xf32>
    %cst_13 = arith.constant 0.000000e+00 : f32
    %19 = vector.broadcast %cst_13 : f32 to vector<32x32xf32>
    %20 = arith.maximumf %18, %19 : vector<32x32xf32>
    %c56 = arith.constant 56 : index
    %c0_14 = arith.constant 0 : index
    %21 = vector.load %arg3[%c56, %c0_14] : memref<928x128xf32, #tpu.memory_space<vmem>>, vector<64x64xf32>
    %c160 = arith.constant 160 : index
    %c0_15 = arith.constant 0 : index
    %22 = vector.load %arg3[%c160, %c0_15] : memref<928x128xf32, #tpu.memory_space<vmem>>, vector<32x96xf32>
    %cst_16 = arith.constant dense<0.000000e+00> : vector<32x96xf32>
    %23 = tpu.matmul %20, %22, %cst_16 {dimension_numbers = #tpu.dot_dimension_numbers<[1], [0], [0], [1], [0, 0, 1, 1], [], []>} : vector<32x32xf32>, vector<32x96xf32>, vector<32x96xf32> -> vector<32x96xf32>
    %c192 = arith.constant 192 : index
    %c0_17 = arith.constant 0 : index
    %24 = vector.load %arg3[%c192, %c0_17] : memref<928x128xf32, #tpu.memory_space<vmem>>, vector<32x96xf32>
    %25 = arith.addf %23, %24 : vector<32x96xf32>
    %26 = vector.extract_strided_slice %25 {offsets = [0, 0], sizes = [32, 16], strides = [1, 1]} : vector<32x96xf32> to vector<32x16xf32>
    %27 = vector.extract_strided_slice %25 {offsets = [0, 16], sizes = [32, 16], strides = [1, 1]} : vector<32x96xf32> to vector<32x16xf32>
    %28 = tpu.concatenate %26, %27 in 0 : vector<32x16xf32>, vector<32x16xf32> -> vector<64x16xf32>
    %29 = vector.extract_strided_slice %25 {offsets = [0, 32], sizes = [32, 16], strides = [1, 1]} : vector<32x96xf32> to vector<32x16xf32>
    %30 = vector.extract_strided_slice %25 {offsets = [0, 48], sizes = [32, 16], strides = [1, 1]} : vector<32x96xf32> to vector<32x16xf32>
    %31 = tpu.concatenate %29, %30 in 0 : vector<32x16xf32>, vector<32x16xf32> -> vector<64x16xf32>
    %32 = vector.extract_strided_slice %25 {offsets = [0, 64], sizes = [32, 16], strides = [1, 1]} : vector<32x96xf32> to vector<32x16xf32>
    %33 = vector.extract_strided_slice %25 {offsets = [0, 80], sizes = [32, 16], strides = [1, 1]} : vector<32x96xf32> to vector<32x16xf32>
    %34 = tpu.concatenate %32, %33 in 0 : vector<32x16xf32>, vector<32x16xf32> -> vector<64x16xf32>
    %cst_18 = arith.constant dense<0.000000e+00> : vector<64x64xf32>
    %35 = tpu.matmul %28, %31, %cst_18 {dimension_numbers = #tpu.dot_dimension_numbers<[1], [1], [0], [0], [0, 0, 1, 0], [], []>} : vector<64x16xf32>, vector<64x16xf32>, vector<64x64xf32> -> vector<64x64xf32>
    %36 = arith.addf %35, %21 : vector<64x64xf32>
    %cst_19 = arith.constant dense<0xFF800000> : vector<64xf32>
    %37 = vector.multi_reduction <maximumf>, %36, %cst_19 [1] : vector<64x64xf32> to vector<64xf32>
    %38 = vector.shape_cast %37 : vector<64xf32> to vector<64x1xf32>
    %39 = vector.broadcast %38 : vector<64x1xf32> to vector<64x64xf32>
    %40 = arith.subf %36, %39 : vector<64x64xf32>
    %41 = math.exp %40 : vector<64x64xf32>
    %cst_20 = arith.constant dense<0.000000e+00> : vector<64xf32>
    %42 = vector.multi_reduction <add>, %41, %cst_20 [1] : vector<64x64xf32> to vector<64xf32>
    %43 = vector.shape_cast %42 : vector<64xf32> to vector<64x1xf32>
    %44 = tpu.reciprocal %43 {approx = true} : vector<64x1xf32> -> vector<64x1xf32>
    %45 = vector.broadcast %44 : vector<64x1xf32> to vector<64x64xf32>
    %46 = arith.mulf %41, %45 : vector<64x64xf32>
    %cst_21 = arith.constant dense<0.000000e+00> : vector<64x16xf32>
    %47 = tpu.matmul %46, %34, %cst_21 {dimension_numbers = #tpu.dot_dimension_numbers<[1], [0], [0], [1], [0, 0, 1, 1], [], []>} : vector<64x64xf32>, vector<64x16xf32>, vector<64x16xf32> -> vector<64x16xf32>
    %48 = vector.extract_strided_slice %47 {offsets = [0, 0], sizes = [32, 16], strides = [1, 1]} : vector<64x16xf32> to vector<32x16xf32>
    %49 = vector.extract_strided_slice %47 {offsets = [32, 0], sizes = [32, 16], strides = [1, 1]} : vector<64x16xf32> to vector<32x16xf32>
    %50 = tpu.concatenate %48, %49 in 1 : vector<32x16xf32>, vector<32x16xf32> -> vector<32x32xf32>
    %c224 = arith.constant 224 : index
    %c0_22 = arith.constant 0 : index
    %51 = vector.load %arg3[%c224, %c0_22] : memref<928x128xf32, #tpu.memory_space<vmem>>, vector<32x32xf32>
    %cst_23 = arith.constant dense<0.000000e+00> : vector<32x32xf32>
    %52 = tpu.matmul %50, %51, %cst_23 {dimension_numbers = #tpu.dot_dimension_numbers<[1], [0], [0], [1], [0, 0, 1, 1], [], []>} : vector<32x32xf32>, vector<32x32xf32>, vector<32x32xf32> -> vector<32x32xf32>
    %c256 = arith.constant 256 : index
    %c0_24 = arith.constant 0 : index
    %53 = vector.load %arg3[%c256, %c0_24] : memref<928x128xf32, #tpu.memory_space<vmem>>, vector<32x32xf32>
    %54 = arith.addf %52, %53 : vector<32x32xf32>
    %55 = arith.addf %20, %54 : vector<32x32xf32>
    %c288 = arith.constant 288 : index
    %c0_25 = arith.constant 0 : index
    %56 = vector.load %arg3[%c288, %c0_25] : memref<928x128xf32, #tpu.memory_space<vmem>>, vector<32x32xf32>
    %c320 = arith.constant 320 : index
    %c0_26 = arith.constant 0 : index
    %57 = vector.load %arg3[%c320, %c0_26] : memref<928x128xf32, #tpu.memory_space<vmem>>, vector<32x32xf32>
    %cst_27 = arith.constant dense<0.000000e+00> : vector<32xf32>
    %58 = vector.multi_reduction <add>, %55, %cst_27 [1] : vector<32x32xf32> to vector<32xf32>
    %59 = vector.shape_cast %58 : vector<32xf32> to vector<32x1xf32>
    %cst_28 = arith.constant 3.200000e+01 : f32
    %60 = vector.broadcast %cst_28 : f32 to vector<32x1xf32>
    %61 = arith.divf %59, %60 : vector<32x1xf32>
    %62 = vector.broadcast %61 : vector<32x1xf32> to vector<32x32xf32>
    %63 = arith.subf %55, %62 : vector<32x32xf32>
    %64 = arith.mulf %63, %63 : vector<32x32xf32>
    %cst_29 = arith.constant dense<0.000000e+00> : vector<32xf32>
    %65 = vector.multi_reduction <add>, %64, %cst_29 [1] : vector<32x32xf32> to vector<32xf32>
    %66 = vector.shape_cast %65 : vector<32xf32> to vector<32x1xf32>
    %cst_30 = arith.constant 3.200000e+01 : f32
    %67 = vector.broadcast %cst_30 : f32 to vector<32x1xf32>
    %68 = arith.divf %66, %67 : vector<32x1xf32>
    %69 = vector.broadcast %61 : vector<32x1xf32> to vector<32x32xf32>
    %70 = arith.subf %55, %69 : vector<32x32xf32>
    %cst_31 = arith.constant 9.99999974E-6 : f32
    %71 = vector.broadcast %cst_31 : f32 to vector<32x1xf32>
    %72 = arith.addf %68, %71 : vector<32x1xf32>
    %73 = math.rsqrt %72 : vector<32x1xf32>
    %74 = vector.broadcast %73 : vector<32x1xf32> to vector<32x32xf32>
    %75 = arith.mulf %70, %74 : vector<32x32xf32>
    %76 = arith.mulf %75, %56 : vector<32x32xf32>
    %77 = arith.addf %76, %57 : vector<32x32xf32>
    %c352 = arith.constant 352 : index
    %c0_32 = arith.constant 0 : index
    %78 = vector.load %arg3[%c352, %c0_32] : memref<928x128xf32, #tpu.memory_space<vmem>>, vector<32x32xf32>
    %cst_33 = arith.constant dense<0.000000e+00> : vector<32x32xf32>
    %79 = tpu.matmul %77, %78, %cst_33 {dimension_numbers = #tpu.dot_dimension_numbers<[1], [0], [0], [1], [0, 0, 1, 1], [], []>} : vector<32x32xf32>, vector<32x32xf32>, vector<32x32xf32> -> vector<32x32xf32>
    %c384 = arith.constant 384 : index
    %c0_34 = arith.constant 0 : index
    %80 = vector.load %arg3[%c384, %c0_34] : memref<928x128xf32, #tpu.memory_space<vmem>>, vector<32x32xf32>
    %81 = arith.addf %79, %80 : vector<32x32xf32>
    %cst_35 = arith.constant 0.000000e+00 : f32
    %82 = vector.broadcast %cst_35 : f32 to vector<32x32xf32>
    %83 = arith.maximumf %81, %82 : vector<32x32xf32>
    %c416 = arith.constant 416 : index
    %c0_36 = arith.constant 0 : index
    %84 = vector.load %arg3[%c416, %c0_36] : memref<928x128xf32, #tpu.memory_space<vmem>>, vector<32x32xf32>
    %cst_37 = arith.constant dense<0.000000e+00> : vector<32x32xf32>
    %85 = tpu.matmul %83, %84, %cst_37 {dimension_numbers = #tpu.dot_dimension_numbers<[1], [0], [0], [1], [0, 0, 1, 1], [], []>} : vector<32x32xf32>, vector<32x32xf32>, vector<32x32xf32> -> vector<32x32xf32>
    %c448 = arith.constant 448 : index
    %c0_38 = arith.constant 0 : index
    %86 = vector.load %arg3[%c448, %c0_38] : memref<928x128xf32, #tpu.memory_space<vmem>>, vector<32x32xf32>
    %87 = arith.addf %85, %86 : vector<32x32xf32>
    %cst_39 = arith.constant 0.000000e+00 : f32
    %88 = vector.broadcast %cst_39 : f32 to vector<32x32xf32>
    %89 = arith.maximumf %87, %88 : vector<32x32xf32>
    %90 = arith.addf %77, %89 : vector<32x32xf32>
    %c480 = arith.constant 480 : index
    %c0_40 = arith.constant 0 : index
    %91 = vector.load %arg3[%c480, %c0_40] : memref<928x128xf32, #tpu.memory_space<vmem>>, vector<32x32xf32>
    %c512 = arith.constant 512 : index
    %c0_41 = arith.constant 0 : index
    %92 = vector.load %arg3[%c512, %c0_41] : memref<928x128xf32, #tpu.memory_space<vmem>>, vector<32x32xf32>
    %cst_42 = arith.constant dense<0.000000e+00> : vector<32xf32>
    %93 = vector.multi_reduction <add>, %90, %cst_42 [1] : vector<32x32xf32> to vector<32xf32>
    %94 = vector.shape_cast %93 : vector<32xf32> to vector<32x1xf32>
    %cst_43 = arith.constant 3.200000e+01 : f32
    %95 = vector.broadcast %cst_43 : f32 to vector<32x1xf32>
    %96 = arith.divf %94, %95 : vector<32x1xf32>
    %97 = vector.broadcast %96 : vector<32x1xf32> to vector<32x32xf32>
    %98 = arith.subf %90, %97 : vector<32x32xf32>
    %99 = arith.mulf %98, %98 : vector<32x32xf32>
    %cst_44 = arith.constant dense<0.000000e+00> : vector<32xf32>
    %100 = vector.multi_reduction <add>, %99, %cst_44 [1] : vector<32x32xf32> to vector<32xf32>
    %101 = vector.shape_cast %100 : vector<32xf32> to vector<32x1xf32>
    %cst_45 = arith.constant 3.200000e+01 : f32
    %102 = vector.broadcast %cst_45 : f32 to vector<32x1xf32>
    %103 = arith.divf %101, %102 : vector<32x1xf32>
    %104 = vector.broadcast %96 : vector<32x1xf32> to vector<32x32xf32>
    %105 = arith.subf %90, %104 : vector<32x32xf32>
    %cst_46 = arith.constant 9.99999974E-6 : f32
    %106 = vector.broadcast %cst_46 : f32 to vector<32x1xf32>
    %107 = arith.addf %103, %106 : vector<32x1xf32>
    %108 = math.rsqrt %107 : vector<32x1xf32>
    %109 = vector.broadcast %108 : vector<32x1xf32> to vector<32x32xf32>
    %110 = arith.mulf %105, %109 : vector<32x32xf32>
    %111 = arith.mulf %110, %91 : vector<32x32xf32>
    %112 = arith.addf %111, %92 : vector<32x32xf32>
    %c544 = arith.constant 544 : index
    %c0_47 = arith.constant 0 : index
    %113 = vector.load %arg3[%c544, %c0_47] : memref<928x128xf32, #tpu.memory_space<vmem>>, vector<32x96xf32>
    %cst_48 = arith.constant dense<0.000000e+00> : vector<32x96xf32>
    %114 = tpu.matmul %112, %113, %cst_48 {dimension_numbers = #tpu.dot_dimension_numbers<[1], [0], [0], [1], [0, 0, 1, 1], [], []>} : vector<32x32xf32>, vector<32x96xf32>, vector<32x96xf32> -> vector<32x96xf32>
    %c576 = arith.constant 576 : index
    %c0_49 = arith.constant 0 : index
    %115 = vector.load %arg3[%c576, %c0_49] : memref<928x128xf32, #tpu.memory_space<vmem>>, vector<32x96xf32>
    %116 = arith.addf %114, %115 : vector<32x96xf32>
    %117 = vector.extract_strided_slice %116 {offsets = [0, 0], sizes = [32, 16], strides = [1, 1]} : vector<32x96xf32> to vector<32x16xf32>
    %118 = vector.extract_strided_slice %116 {offsets = [0, 16], sizes = [32, 16], strides = [1, 1]} : vector<32x96xf32> to vector<32x16xf32>
    %119 = tpu.concatenate %117, %118 in 0 : vector<32x16xf32>, vector<32x16xf32> -> vector<64x16xf32>
    %120 = vector.extract_strided_slice %116 {offsets = [0, 32], sizes = [32, 16], strides = [1, 1]} : vector<32x96xf32> to vector<32x16xf32>
    %121 = vector.extract_strided_slice %116 {offsets = [0, 48], sizes = [32, 16], strides = [1, 1]} : vector<32x96xf32> to vector<32x16xf32>
    %122 = tpu.concatenate %120, %121 in 0 : vector<32x16xf32>, vector<32x16xf32> -> vector<64x16xf32>
    %123 = vector.extract_strided_slice %116 {offsets = [0, 64], sizes = [32, 16], strides = [1, 1]} : vector<32x96xf32> to vector<32x16xf32>
    %124 = vector.extract_strided_slice %116 {offsets = [0, 80], sizes = [32, 16], strides = [1, 1]} : vector<32x96xf32> to vector<32x16xf32>
    %125 = tpu.concatenate %123, %124 in 0 : vector<32x16xf32>, vector<32x16xf32> -> vector<64x16xf32>
    %cst_50 = arith.constant dense<0.000000e+00> : vector<64x64xf32>
    %126 = tpu.matmul %119, %122, %cst_50 {dimension_numbers = #tpu.dot_dimension_numbers<[1], [1], [0], [0], [0, 0, 1, 0], [], []>} : vector<64x16xf32>, vector<64x16xf32>, vector<64x64xf32> -> vector<64x64xf32>
    %127 = arith.addf %126, %21 : vector<64x64xf32>
    %cst_51 = arith.constant dense<0xFF800000> : vector<64xf32>
    %128 = vector.multi_reduction <maximumf>, %127, %cst_51 [1] : vector<64x64xf32> to vector<64xf32>
    %129 = vector.shape_cast %128 : vector<64xf32> to vector<64x1xf32>
    %130 = vector.broadcast %129 : vector<64x1xf32> to vector<64x64xf32>
    %131 = arith.subf %127, %130 : vector<64x64xf32>
    %132 = math.exp %131 : vector<64x64xf32>
    %cst_52 = arith.constant dense<0.000000e+00> : vector<64xf32>
    %133 = vector.multi_reduction <add>, %132, %cst_52 [1] : vector<64x64xf32> to vector<64xf32>
    %134 = vector.shape_cast %133 : vector<64xf32> to vector<64x1xf32>
    %135 = tpu.reciprocal %134 {approx = true} : vector<64x1xf32> -> vector<64x1xf32>
    %136 = vector.broadcast %135 : vector<64x1xf32> to vector<64x64xf32>
    %137 = arith.mulf %132, %136 : vector<64x64xf32>
    %cst_53 = arith.constant dense<0.000000e+00> : vector<64x16xf32>
    %138 = tpu.matmul %137, %125, %cst_53 {dimension_numbers = #tpu.dot_dimension_numbers<[1], [0], [0], [1], [0, 0, 1, 1], [], []>} : vector<64x64xf32>, vector<64x16xf32>, vector<64x16xf32> -> vector<64x16xf32>
    %139 = vector.extract_strided_slice %138 {offsets = [0, 0], sizes = [32, 16], strides = [1, 1]} : vector<64x16xf32> to vector<32x16xf32>
    %140 = vector.extract_strided_slice %138 {offsets = [32, 0], sizes = [32, 16], strides = [1, 1]} : vector<64x16xf32> to vector<32x16xf32>
    %141 = tpu.concatenate %139, %140 in 1 : vector<32x16xf32>, vector<32x16xf32> -> vector<32x32xf32>
    %c608 = arith.constant 608 : index
    %c0_54 = arith.constant 0 : index
    %142 = vector.load %arg3[%c608, %c0_54] : memref<928x128xf32, #tpu.memory_space<vmem>>, vector<32x32xf32>
    %cst_55 = arith.constant dense<0.000000e+00> : vector<32x32xf32>
    %143 = tpu.matmul %141, %142, %cst_55 {dimension_numbers = #tpu.dot_dimension_numbers<[1], [0], [0], [1], [0, 0, 1, 1], [], []>} : vector<32x32xf32>, vector<32x32xf32>, vector<32x32xf32> -> vector<32x32xf32>
    %c640 = arith.constant 640 : index
    %c0_56 = arith.constant 0 : index
    %144 = vector.load %arg3[%c640, %c0_56] : memref<928x128xf32, #tpu.memory_space<vmem>>, vector<32x32xf32>
    %145 = arith.addf %143, %144 : vector<32x32xf32>
    %146 = arith.addf %112, %145 : vector<32x32xf32>
    %c672 = arith.constant 672 : index
    %c0_57 = arith.constant 0 : index
    %147 = vector.load %arg3[%c672, %c0_57] : memref<928x128xf32, #tpu.memory_space<vmem>>, vector<32x32xf32>
    %c704 = arith.constant 704 : index
    %c0_58 = arith.constant 0 : index
    %148 = vector.load %arg3[%c704, %c0_58] : memref<928x128xf32, #tpu.memory_space<vmem>>, vector<32x32xf32>
    %cst_59 = arith.constant dense<0.000000e+00> : vector<32xf32>
    %149 = vector.multi_reduction <add>, %146, %cst_59 [1] : vector<32x32xf32> to vector<32xf32>
    %150 = vector.shape_cast %149 : vector<32xf32> to vector<32x1xf32>
    %cst_60 = arith.constant 3.200000e+01 : f32
    %151 = vector.broadcast %cst_60 : f32 to vector<32x1xf32>
    %152 = arith.divf %150, %151 : vector<32x1xf32>
    %153 = vector.broadcast %152 : vector<32x1xf32> to vector<32x32xf32>
    %154 = arith.subf %146, %153 : vector<32x32xf32>
    %155 = arith.mulf %154, %154 : vector<32x32xf32>
    %cst_61 = arith.constant dense<0.000000e+00> : vector<32xf32>
    %156 = vector.multi_reduction <add>, %155, %cst_61 [1] : vector<32x32xf32> to vector<32xf32>
    %157 = vector.shape_cast %156 : vector<32xf32> to vector<32x1xf32>
    %cst_62 = arith.constant 3.200000e+01 : f32
    %158 = vector.broadcast %cst_62 : f32 to vector<32x1xf32>
    %159 = arith.divf %157, %158 : vector<32x1xf32>
    %160 = vector.broadcast %152 : vector<32x1xf32> to vector<32x32xf32>
    %161 = arith.subf %146, %160 : vector<32x32xf32>
    %cst_63 = arith.constant 9.99999974E-6 : f32
    %162 = vector.broadcast %cst_63 : f32 to vector<32x1xf32>
    %163 = arith.addf %159, %162 : vector<32x1xf32>
    %164 = math.rsqrt %163 : vector<32x1xf32>
    %165 = vector.broadcast %164 : vector<32x1xf32> to vector<32x32xf32>
    %166 = arith.mulf %161, %165 : vector<32x32xf32>
    %167 = arith.mulf %166, %147 : vector<32x32xf32>
    %168 = arith.addf %167, %148 : vector<32x32xf32>
    %c736 = arith.constant 736 : index
    %c0_64 = arith.constant 0 : index
    %169 = vector.load %arg3[%c736, %c0_64] : memref<928x128xf32, #tpu.memory_space<vmem>>, vector<32x32xf32>
    %cst_65 = arith.constant dense<0.000000e+00> : vector<32x32xf32>
    %170 = tpu.matmul %168, %169, %cst_65 {dimension_numbers = #tpu.dot_dimension_numbers<[1], [0], [0], [1], [0, 0, 1, 1], [], []>} : vector<32x32xf32>, vector<32x32xf32>, vector<32x32xf32> -> vector<32x32xf32>
    %c768 = arith.constant 768 : index
    %c0_66 = arith.constant 0 : index
    %171 = vector.load %arg3[%c768, %c0_66] : memref<928x128xf32, #tpu.memory_space<vmem>>, vector<32x32xf32>
    %172 = arith.addf %170, %171 : vector<32x32xf32>
    %cst_67 = arith.constant 0.000000e+00 : f32
    %173 = vector.broadcast %cst_67 : f32 to vector<32x32xf32>
    %174 = arith.maximumf %172, %173 : vector<32x32xf32>
    %c800 = arith.constant 800 : index
    %c0_68 = arith.constant 0 : index
    %175 = vector.load %arg3[%c800, %c0_68] : memref<928x128xf32, #tpu.memory_space<vmem>>, vector<32x32xf32>
    %cst_69 = arith.constant dense<0.000000e+00> : vector<32x32xf32>
    %176 = tpu.matmul %174, %175, %cst_69 {dimension_numbers = #tpu.dot_dimension_numbers<[1], [0], [0], [1], [0, 0, 1, 1], [], []>} : vector<32x32xf32>, vector<32x32xf32>, vector<32x32xf32> -> vector<32x32xf32>
    %c832 = arith.constant 832 : index
    %c0_70 = arith.constant 0 : index
    %177 = vector.load %arg3[%c832, %c0_70] : memref<928x128xf32, #tpu.memory_space<vmem>>, vector<32x32xf32>
    %178 = arith.addf %176, %177 : vector<32x32xf32>
    %cst_71 = arith.constant 0.000000e+00 : f32
    %179 = vector.broadcast %cst_71 : f32 to vector<32x32xf32>
    %180 = arith.maximumf %178, %179 : vector<32x32xf32>
    %181 = arith.addf %168, %180 : vector<32x32xf32>
    %c864 = arith.constant 864 : index
    %c0_72 = arith.constant 0 : index
    %182 = vector.load %arg3[%c864, %c0_72] : memref<928x128xf32, #tpu.memory_space<vmem>>, vector<32x32xf32>
    %c896 = arith.constant 896 : index
    %c0_73 = arith.constant 0 : index
    %183 = vector.load %arg3[%c896, %c0_73] : memref<928x128xf32, #tpu.memory_space<vmem>>, vector<32x32xf32>
    %cst_74 = arith.constant dense<0.000000e+00> : vector<32xf32>
    %184 = vector.multi_reduction <add>, %181, %cst_74 [1] : vector<32x32xf32> to vector<32xf32>
    %185 = vector.shape_cast %184 : vector<32xf32> to vector<32x1xf32>
    %cst_75 = arith.constant 3.200000e+01 : f32
    %186 = vector.broadcast %cst_75 : f32 to vector<32x1xf32>
    %187 = arith.divf %185, %186 : vector<32x1xf32>
    %188 = vector.broadcast %187 : vector<32x1xf32> to vector<32x32xf32>
    %189 = arith.subf %181, %188 : vector<32x32xf32>
    %190 = arith.mulf %189, %189 : vector<32x32xf32>
    %cst_76 = arith.constant dense<0.000000e+00> : vector<32xf32>
    %191 = vector.multi_reduction <add>, %190, %cst_76 [1] : vector<32x32xf32> to vector<32xf32>
    %192 = vector.shape_cast %191 : vector<32xf32> to vector<32x1xf32>
    %cst_77 = arith.constant 3.200000e+01 : f32
    %193 = vector.broadcast %cst_77 : f32 to vector<32x1xf32>
    %194 = arith.divf %192, %193 : vector<32x1xf32>
    %195 = vector.broadcast %187 : vector<32x1xf32> to vector<32x32xf32>
    %196 = arith.subf %181, %195 : vector<32x32xf32>
    %cst_78 = arith.constant 9.99999974E-6 : f32
    %197 = vector.broadcast %cst_78 : f32 to vector<32x1xf32>
    %198 = arith.addf %194, %197 : vector<32x1xf32>
    %199 = math.rsqrt %198 : vector<32x1xf32>
    %200 = vector.broadcast %199 : vector<32x1xf32> to vector<32x32xf32>
    %201 = arith.mulf %196, %200 : vector<32x32xf32>
    %202 = arith.mulf %201, %182 : vector<32x32xf32>
    %203 = arith.addf %202, %183 : vector<32x32xf32>
    %204 = vector.extract_strided_slice %203 {offsets = [0, 0], sizes = [16, 32], strides = [1, 1]} : vector<32x32xf32> to vector<16x32xf32>
    %cst_79 = arith.constant dense<0.000000e+00> : vector<32xf32>
    %205 = vector.multi_reduction <add>, %204, %cst_79 [0] : vector<16x32xf32> to vector<32xf32>
    %206 = vector.shape_cast %205 : vector<32xf32> to vector<1x32xf32>
    %cst_80 = arith.constant 1.600000e+01 : f32
    %207 = vector.broadcast %cst_80 : f32 to vector<1x32xf32>
    %208 = arith.divf %206, %207 : vector<1x32xf32>
    %209 = vector.extract_strided_slice %203 {offsets = [16, 0], sizes = [16, 32], strides = [1, 1]} : vector<32x32xf32> to vector<16x32xf32>
    %cst_81 = arith.constant dense<0.000000e+00> : vector<32xf32>
    %210 = vector.multi_reduction <add>, %209, %cst_81 [0] : vector<16x32xf32> to vector<32xf32>
    %211 = vector.shape_cast %210 : vector<32xf32> to vector<1x32xf32>
    %cst_82 = arith.constant 1.600000e+01 : f32
    %212 = vector.broadcast %cst_82 : f32 to vector<1x32xf32>
    %213 = arith.divf %211, %212 : vector<1x32xf32>
    %214 = tpu.concatenate %208, %213 in 0 : vector<1x32xf32>, vector<1x32xf32> -> vector<2x32xf32>
    %c120 = arith.constant 120 : index
    %c0_83 = arith.constant 0 : index
    %215 = vector.load %arg3[%c120, %c0_83] : memref<928x128xf32, #tpu.memory_space<vmem>>, vector<32x128xf32>
    %cst_84 = arith.constant dense<0.000000e+00> : vector<2x128xf32>
    %216 = tpu.matmul %214, %215, %cst_84 {dimension_numbers = #tpu.dot_dimension_numbers<[1], [0], [0], [1], [0, 0, 1, 1], [], []>} : vector<2x32xf32>, vector<32x128xf32>, vector<2x128xf32> -> vector<2x128xf32>
    %c152 = arith.constant 152 : index
    %c0_85 = arith.constant 0 : index
    %217 = vector.load %arg3[%c152, %c0_85] : memref<928x128xf32, #tpu.memory_space<vmem>>, vector<2x128xf32>
    %218 = arith.addf %216, %217 : vector<2x128xf32>
    %cst_86 = arith.constant 0.000000e+00 : f32
    %219 = vector.broadcast %cst_86 : f32 to vector<2x128xf32>
    %220 = arith.maximumf %218, %219 : vector<2x128xf32>
    %c0_87 = arith.constant 0 : index
    %c0_88 = arith.constant 0 : index
    %c0_89 = arith.constant 0 : index
    %221 = vector.load %arg4[%c0_87, %c0_88, %c0_89] : memref<1x2x128xf32, #tpu.memory_space<vmem>>, vector<1x2x128xf32>
    %222 = vector.shape_cast %221 : vector<1x2x128xf32> to vector<2x128xf32>
    %223 = vector.shape_cast %220 : vector<2x128xf32> to vector<1x2x128xf32>
    tpu.vector_store %arg4[%c0_87, %c0_88, %c0_89], %223 {strides = array<i32>} : memref<1x2x128xf32, #tpu.memory_space<vmem>>, vector<1x2x128xf32>,
    return
  }
  func.func @transform_0(%arg0: i32) -> (i32, i32, i32) {
    %c0_i32 = arith.constant 0 : i32
    %c0_i32_0 = arith.constant 0 : i32
    %c0_i32_1 = arith.constant 0 : i32
    return %arg0, %c0_i32, %c0_i32_0 : i32, i32, i32
  }
  func.func @transform_1(%arg0: i32) -> (i32, i32) {
    %c0_i32 = arith.constant 0 : i32
    %c0_i32_0 = arith.constant 0 : i32
    %c0_i32_1 = arith.constant 0 : i32
    return %c0_i32, %c0_i32_0 : i32, i32
  }
  func.func @transform_2(%arg0: i32) -> (i32, i32) {
    %c0_i32 = arith.constant 0 : i32
    %c0_i32_0 = arith.constant 0 : i32
    %c0_i32_1 = arith.constant 0 : i32
    return %c0_i32, %c0_i32_0 : i32, i32
  }
  func.func @transform_3(%arg0: i32) -> (i32, i32, i32) {
    %c0_i32 = arith.constant 0 : i32
    %c0_i32_0 = arith.constant 0 : i32
    %c0_i32_1 = arith.constant 0 : i32
    return %arg0, %c0_i32, %c0_i32_0 : i32, i32, i32
  }
}

</mosaic_0001>

<bundles_post_ra>
// kernel: _lambda_.1
= control target key start
LH: loop header
LB: loop body
LE: loop exit
PB: predicated region body
PF: predicated region fallthrough
CT: control target
= control target key end

     0   :  { %8 = vsyncpa [#allocation3], 0  ;;  %s4890_s0 = inlined_call_operand.vmem [shape: f32[1,3,1792], index: 0, kind: input, shape index: {}]   ;;  %s4891_s1 = inlined_call_operand.vmem [shape: f32[16,896], index: 1, kind: input, shape index: {}]   ;;  %s4892_s2 = inlined_call_operand.hbm [shape: f32[928,128], index: 2, kind: input, shape index: {}]   ;;  %s4893_s3 = inlined_call_operand.hbm [shape: f32[1,2,128], index: 3, kind: output, shape index: {}]  }
   0x1   :  { %9 = vsyncpa [#allocation4], 0  ;;  %s4361_s12 = smov [#allocation2]   ;;  %s4313_s16 = scalar_lea.hbm %s4892_s2, 14848 }
   0x2   :  { %s19_s13 = sshll.u32 %s4361_s12, 4  ;;  %p4314_p0 = scmp.ne.s32.totalorder %s4892_s2, %s4313_s16  ;;  %s20_s13 = int_to_ptr.vmem [resolvable:$true] %s19_s13 }
   0x3   :  { %p4317_p1 = scmp.lt.u32.totalorder %s4313_s16, %s4892_s2 }
   0x5   :  { %p4319_p2 = pnand %p4317_p1, %p4314_p0 }
   0x7   :  { %4322 = shalt.err (!%p4319_p2)
}
   0x8   :  { %s4323_s21 = scalar_lea.vmem %s20_s13, 14848  ;;  %p4328_p4 = scmp.lt.s32.totalorder %s20_s13, %s20_s13 }
   0x9   :  { %p4324_p3 = scmp.ne.s32.totalorder %s20_s13, %s4323_s21  ;;  %p4329_p5 = scmp.lt.s32.totalorder %s4323_s21, %s4323_s21 }
   0xb   :  { %p4330_p6 = por %p4329_p5, %p4328_p4 }
   0xd   :  { %p4331_p7 = pnand %p4330_p6, %p4324_p3 }
   0xf   :  { %4334 = shalt.err (!%p4331_p7)
}
  0x10   :  { %s4362_s22 = smov 128   ;;  %s4363_s23 = smov 8  }
  0x11   :  { %25 = dma.hbm_to_vmem [thread:$0]  %s4892_s2, 14848, %s20_s13, [#allocation3], %s4362_s22, %s4362_s22, %s4363_s23  }
  0x12   :  { %4357 = dma.done.wait [#allocation3], 14848  }
  0x13   :  { %4358 = vsyncadd [#allocation3], 4294952448  ;;  %v4364_v0 = vmov 0.0   ;;  %v4365_v1 = vmov 0   ;;  %v29_v2 = vld [vmem:[%s4890_s0] sm:$0x77] }
  0x14   :  { %154 = vmatprep.mubr.f32.mxu0 %v4364_v0  ;;  %225 = vmatprep.mubr.f32.mxu1 %v4364_v0  ;;  %vm61_vm0 = vcmask 1042432   ;;  %v30_v3 = vld [vmem:[%s4890_s0 + $0x8] sm:$0x77]  ;;  %v50_v4 = vcombine.high %v29_v2, %v29_v2  ;;  %v31_v6 = vld [vmem:[%s4890_s0 + $0x10] sm:$0x77]  ;;  %v36_v8 = vld [vmem:[#allocation2] sm:$0xff] }
  0x15   :  { %4129 = vset.pattern.permute.xlu0 %v4365_v1  ;;  %v51_v5 = vcombine.high %v30_v3, %v30_v3  ;;  %v32_v7 = vld [vmem:[%s4890_s0 + $0x18] sm:$0x77]  ;;  %vm57_vm1 = vcmask 23552   ;;  %v52_v9 = vcombine.high %v31_v6, %v31_v6  ;;  %v33_v11 = vld [vmem:[%s4890_s0 + $0x20] sm:$0x77]  ;;  %v37_v17 = vld [vmem:[#allocation2 + $0x8] sm:$0xff] }
  0x16   :  { %v53_v10 = vcombine.high %v32_v7, %v32_v7  ;;  %3448 = vmatprep.subr.msk.mxu0 %vm61_vm0, %v50_v4  ;;  %v34_v12 = vld [vmem:[%s4890_s0 + $0x28] sm:$0x77]  ;;  %v54_v13 = vcombine.high %v33_v11, %v33_v11  ;;  %v35_v15 = vld [vmem:[%s4890_s0 + $0x30] sm:$0x77]  ;;  %40 = vperm.xlu0 %4129, %v37_v17   ;;  %v601_v39 = vld [vmem:[%s4891_s1] sm:$0xff]  ;;  %vm1220_vm2 = vcmask 64512  }
  0x17   :  { %3451 = vmatprep.subr.msk.mxu1 %vm61_vm0, %v51_v5  ;;  %3449 = vmatpush1.msk.msra.mxu0 %vm61_vm0, %v29_v2  ;;  %v55_v14 = vcombine.high %v34_v12, %v34_v12  ;;  %v56_v16 = vcombine.high %v35_v15, %v35_v15  ;;  %v602_v18 = vld [vmem:[%s4891_s1 + $0x8] sm:$0xff]  ;;  %v4460_v19 = vld [vmem:[%s4891_s1 + $0x30] sm:$0xff]  ;;  %v609_v43 = vld [vmem:[%s4891_s1 + $0x40] sm:$0xff]  ;;  %vm1338_vm3 = vcmask 261120   ;;  %vm1464_vm4 = vcmask 130048   ;;  %s4367_s11 = smov 96  }
  0x18   :  { %3452 = vmatpush1.msk.msra.mxu1 %vm61_vm0, %v30_v3  ;;  %3450 = vmatmul.mubr.msk.f32.vlgmr.msra.gmra.mrb[0].mxu0 %vm57_vm1, %v36_v8  ;;  %v614_v50 = vld [vmem:[%s4891_s1 + $0x68] sm:$0xff]  ;;  %v608_v52 = vld [vmem:[%s4891_s1 + $0x38] sm:$0xff]  ;;  %v603_v62 = vld [vmem:[%s4891_s1 + $0x10] sm:$0xff]  ;;  %vm1602_vm6 = vcmask 523264   ;;  %s4368_s0 = smov 64   ;;  %s4369_s12 = smov 16  }
  0x19   :  { %3453 = vmatmul.mubr.msk.f32.vlgmr.msra.gmra.mrb[0].mxu1 %vm57_vm1, %v36_v8  ;;  %3454 = vmatprep.subr.msk.mxu0 %vm61_vm0, %v52_v9  ;;  %v604_v60 = vld [vmem:[%s4891_s1 + $0x18] sm:$0xff]  ;;  %v611_v4 = vld [vmem:[%s4891_s1 + $0x50] sm:$0xff]  ;;  %v610_v5 = vld [vmem:[%s4891_s1 + $0x48] sm:$0xff]  ;;  %vm4371_vm7 = vmmov 0   ;;  %vm3351_vm8 = vcmask 1040384   ;;  %s4372_s13 = smov [#allocation5]  }
  0x1a   :  { %3457 = vmatprep.subr.msk.mxu1 %vm61_vm0, %v53_v10  ;;  %3455 = vmatpush1.msk.msra.mxu0 %vm61_vm0, %v31_v6  ;;  %v613_v10 = vld [vmem:[%s4891_s1 + $0x60] sm:$0xff]  ;;  %vm4567_vm5 = vmpackc.low %vm1464_vm4, %vm1464_vm4  ;;  %s3439_s14 = sshll.u32 %s4372_s13, 4  ;;  %s3440_s14 = int_to_ptr.vmem [resolvable:$true] %s3439_s14 }
  0x1b   :  { %3458 = vmatpush1.msk.msra.mxu1 %vm61_vm0, %v32_v7  ;;  %296 = vmatprep.mubr.f32.mxu0 %v4364_v0  ;;  %v606_v7 = vld [vmem:[%s4891_s1 + $0x28] sm:$0xff]  ;;  %s4335_s15 = scalar_lea.vmem %s3440_s14, 32  ;;  %p4340_p9 = scmp.lt.s32.totalorder %s3440_s14, %s3440_s14 }
  0x1c   :  { %367 = vmatprep.mubr.f32.mxu1 %v4364_v0  ;;  %3456 = vmatmul.mubr.msk.f32.vlgmr.msra.gmra.mrb[2].mxu0 %vm57_vm1, %v36_v8  ;;  %p4336_p8 = scmp.ne.s32.totalorder %s3440_s14, %s4335_s15  ;;  %p4341_p10 = scmp.lt.s32.totalorder %s4335_s15, %s4335_s15 }
  0x1d   :  { %3459 = vmatmul.mubr.msk.f32.vlgmr.msra.gmra.mrb[2].mxu1 %vm57_vm1, %v36_v8  ;;  %3460 = vmatprep.subr.msk.mxu0 %vm61_vm0, %v54_v13  ;;  %v1330_v13 = vld [vmem:[#allocation2 + $0xa0] sm:$0xff] }
  0x1e   :  { %3463 = vmatprep.subr.msk.mxu1 %vm61_vm0, %v55_v14  ;;  %3461 = vmatpush1.msk.msra.mxu0 %vm61_vm0, %v33_v11  ;;  %v612_v11 = vld [vmem:[%s4891_s1 + $0x58] sm:$0xff]  ;;  %v1331_v14 = vld [vmem:[#allocation2 + $0xa8] sm:$0xff]  ;;  %p4342_p11 = por %p4341_p10, %p4340_p9 }
  0x1f   :  { %438 = vmatprep.mubr.f32.mxu0 %v4364_v0  ;;  %3464 = vmatpush1.msk.msra.mxu1 %vm61_vm0, %v34_v12  ;;  %v1215_v12 = vld [vmem:[#allocation2 + $0x10] sm:$0xff] }
  0x20   :  { %509 = vmatprep.mubr.f32.mxu1 %v4364_v0  ;;  %3462 = vmatmul.mubr.msk.f32.vlgmr.msra.gmra.mrb[4].mxu0 %vm57_vm1, %v36_v8  ;;  %p4343_p12 = pnand %p4342_p11, %p4336_p8 }
  0x21   :  { %3465 = vmatmul.mubr.msk.f32.vlgmr.msra.gmra.mrb[4].mxu1 %vm57_vm1, %v36_v8  ;;  %3466 = vmatprep.subr.msk.mxu0 %vm61_vm0, %v56_v16 }
  0x22   :  { %580 = vmatprep.mubr.f32.mxu0 %v4364_v0  ;;  %3467 = vmatpush1.msk.msra.mxu0 %vm61_vm0, %v35_v15  ;;  %v3951_v15 = vpack.c.bf16 %v1331_v14, %v1330_v13 }
  0x23   :  { %679 = vmatprep.mubr.f32.mxu1 %v602_v18 }
  0x24   :  { %3468 = vmatmul.mubr.msk.f32.vlgmr.msra.gmra.mrb[6].mxu0 %vm57_vm1, %v36_v8  ;;  %v605_v8 = vld [vmem:[%s4891_s1 + $0x20] sm:$0xff]  ;;  %s4366_s1 = smov 112  }
  0x25   :  { %3700 = vmatprep.mubr.f32.mxu0 %v4460_v19 }
  0x95   :  { %v4463_v20 = vpop.permute.xlu0 %40 }
  0xeb   :  { %v156_v21 = vpop.f32.mrb[0].mxu0 }
  0xec   :  { %v227_v22 = vpop.f32.mrb[0].mxu1  ;;  %v157_v23 = vadd.f32 %v156_v21, %v4463_v20  ;;  %v158_v24 = vpop.f32.mrb[1].mxu0 }
  0xed   :  { %v229_v25 = vpop.f32.mrb[1].mxu1  ;;  %v159_v26 = vadd.f32 %v158_v24, %v4463_v20  ;;  %v228_v32 = vadd.f32 %v227_v22, %v4463_v20 }
  0xee   :  { %v230_v27 = vadd.f32 %v229_v25, %v4463_v20  ;;  %v587_v31 = vmax.f32 %v157_v23, 0.0 }
  0xef   :  { %v588_v28 = vmax.f32 %v159_v26, 0.0  ;;  %v298_v29 = vpop.f32.mrb[2].mxu0  ;;  %v589_v44 = vmax.f32 %v228_v32, 0.0  ;;  %v1332_v32 = vld [vmem:[#allocation2 + $0xb0] sm:$0xff] }
  0xf0   :  { %v369_v30 = vpop.f32.mrb[2].mxu1  ;;  %v300_v34 = vpop.f32.mrb[3].mxu0  ;;  %v590_v36 = vmax.f32 %v230_v27, 0.0  ;;  %v299_v56 = vadd.f32 %v298_v29, %v4463_v20 }
  0xf1   :  { %v370_v33 = vadd.f32 %v369_v30, %v4463_v20  ;;  %v371_v35 = vpop.f32.mrb[3].mxu1  ;;  %v301_v37 = vadd.f32 %v300_v34, %v4463_v20  ;;  %615 = vmatprep.subr.mxu1 %v588_v28 }
  0xf2   :  { %616 = vmatpush1.xpose.msra.mxu1 %v587_v31  ;;  %v372_v40 = vadd.f32 %v371_v35, %v4463_v20  ;;  %v591_v2 = vmax.f32 %v299_v56, 0.0  ;;  %v1217_v35 = vld [vmem:[#allocation2 + $0x20] sm:$0xff] }
  0xf3   :  { %v593_v38 = vmax.f32 %v370_v33, 0.0  ;;  %v440_v41 = vpop.f32.mrb[4].mxu0  ;;  %690 = vmatprep.subr.mxu1 %v590_v36  ;;  %v592_v49 = vmax.f32 %v301_v37, 0.0  ;;  %v1333_v33 = vld [vmem:[#allocation2 + $0xb8] sm:$0xff] }
  0xf4   :  { %v511_v42 = vpop.f32.mrb[4].mxu1  ;;  %v441_v45 = vadd.f32 %v440_v41, %v4463_v20  ;;  %v442_v47 = vpop.f32.mrb[5].mxu0  ;;  %v594_v53 = vmax.f32 %v372_v40, 0.0  ;;  %v3955_v34 = vpack.c.bf16 %v1333_v33, %v1332_v32  ;;  %v1216_v36 = vld [vmem:[#allocation2 + $0x18] sm:$0xff]  ;;  %v4603_v33 = vld [vmem:[#allocation2 + $0x48] sm:$0xff] }
  0xf5   :  { %v512_v46 = vadd.f32 %v511_v42, %v4463_v20  ;;  %v513_v48 = vpop.f32.mrb[5].mxu1  ;;  %3698 = vmatprep.subr.mxu0 %v593_v38  ;;  %680 = vmatmul.mubr.f32.vlgmr.msra.gmra.mrb[6].mxu1 %v601_v39  ;;  %v443_v54 = vadd.f32 %v442_v47, %v4463_v20 }
  0xf6   :  { %3699 = vmatpush3.xpose.msra.mxu0 %v593_v38  ;;  %v595_v51 = vmax.f32 %v441_v45, 0.0  ;;  %691 = vmatpush1.xpose.msra.mxu1 %v589_v44  ;;  %v514_v6 = vadd.f32 %v513_v48, %v4463_v20  ;;  %v1218_v44 = vld [vmem:[#allocation2 + $0x28] sm:$0xff] }
  0xf7   :  { %684 = vmatprep.mubr.f32.mxu1 %v609_v43  ;;  %v582_v55 = vpop.f32.mrb[6].mxu0  ;;  %765 = vmatprep.subr.mxu1 %v592_v49  ;;  %v597_v57 = vmax.f32 %v512_v46, 0.0  ;;  %v596_v63 = vmax.f32 %v443_v54, 0.0 }
  0xf8   :  { %v583_v58 = vadd.f32 %v582_v55, %v4463_v20  ;;  %v584_v59 = vpop.f32.mrb[7].mxu0  ;;  %915 = vmatprep.subr.mxu0 %v595_v51  ;;  %v598_v9 = vmax.f32 %v514_v6, 0.0  ;;  %v1335_v51 = vld [vmem:[#allocation2 + $0xc8] sm:$0xff] }
  0xf9   :  { %3701 = vmatmul.mubr.f32.vlgmr.msra.gmra.mrb[8].mxu0 %v614_v50  ;;  %v585_v61 = vadd.f32 %v584_v59, %v4463_v20  ;;  %685 = vmatmul.mubr.f32.gmra.mrb[8].mxu1 %v608_v52 }
  0xfa   :  { %916 = vmatpush1.xpose.msra.mxu0 %v594_v53  ;;  %979 = vmatprep.mubr.f32.mxu0 %v602_v18  ;;  %v599_v3 = vmax.f32 %v583_v58, 0.0  ;;  %v1336_v58 = vld [vmem:[#allocation2 + $0xd0] sm:$0xff] }
  0xfb   :  { %990 = vmatprep.subr.mxu0 %v597_v57  ;;  %v600_v1 = vmax.f32 %v585_v61, 0.0  ;;  %754 = vmatprep.mubr.f32.mxu1 %v604_v60  ;;  %v1337_v57 = vld [vmem:[#allocation2 + $0xd8] sm:$0xff] }
  0xfd   :  { %980 = vmatmul.mubr.f32.vlgmr.msra.gmra.mrb[10].mxu0 %v601_v39  ;;  %755 = vmatmul.mubr.f32.vlgmr.msra.gmra.mrb[6].mxu1 %v603_v62 }
  0xfe   :  { %991 = vmatpush1.xpose.msra.mxu0 %v596_v63  ;;  %766 = vmatpush1.xpose.msra.mxu1 %v591_v2 }
  0xff   :  { %1065 = vmatprep.subr.mxu0 %v599_v3  ;;  %3703 = vmatprep.subr.mxu1 %v600_v1 }
 0x100   :  { %984 = vmatprep.mubr.f32.mxu0 %v609_v43  ;;  %759 = vmatprep.mubr.f32.mxu1 %v611_v4  ;;  %v1219_v43 = vld [vmem:[#allocation2 + $0x30] sm:$0xff] }
 0x101   :  { %985 = vmatmul.mubr.f32.gmra.mrb[12].mxu0 %v608_v52  ;;  %760 = vmatmul.mubr.f32.gmra.mrb[8].mxu1 %v610_v5  ;;  %v1334_v52 = vld [vmem:[#allocation2 + $0xc0] sm:$0xff] }
 0x102   :  { %1054 = vmatprep.mubr.f32.mxu0 %v604_v60  ;;  %829 = vmatprep.mubr.f32.mxu1 %v606_v7 }
 0x105   :  { %1055 = vmatmul.mubr.f32.vlgmr.msra.gmra.mrb[10].mxu0 %v603_v62  ;;  %830 = vmatmul.mubr.f32.vlgmr.msra.gmra.mrb[6].mxu1 %v605_v8 }
 0x106   :  { %1066 = vmatpush1.xpose.msra.mxu0 %v598_v9  ;;  %3704 = vmatpush3.xpose.msra.mxu1 %v600_v1 }
 0x107   :  { %1059 = vmatprep.mubr.f32.mxu0 %v611_v4  ;;  %834 = vmatprep.mubr.f32.mxu1 %v613_v10 }
 0x108   :  { %3708 = vmatprep.subr.mxu1 %v1215_v12  ;;  %3952 = vmatprep.subr.bf16.mxu0 %v3951_v15 }
 0x109   :  { %1060 = vmatmul.mubr.f32.gmra.mrb[12].mxu0 %v610_v5  ;;  %835 = vmatmul.mubr.f32.gmra.mrb[8].mxu1 %v612_v11 }
 0x10a   :  { %1129 = vmatprep.mubr.f32.mxu0 %v606_v7  ;;  %3705 = vmatprep.mubr.f32.mxu1 %v4460_v19 }
 0x10d   :  { %1130 = vmatmul.mubr.f32.vlgmr.msra.gmra.mrb[10].mxu0 %v605_v8  ;;  %3706 = vmatmul.mubr.f32.vlgmr.msra.gmra.mrb[10].mxu1 %v614_v50 }
 0x10e   :  { %1134 = vmatprep.mubr.f32.mxu0 %v613_v10  ;;  %3709 = vmatpush3.msra.mxu1 %v1215_v12 }
 0x10f   :  { %3954 = vmatpush3.bf16.msra.mxu0 %v3951_v15 }
 0x110   :  { %3956 = vmatprep.subr.bf16.mxu0 %v3955_v34 }
 0x111   :  { %1135 = vmatmul.mubr.f32.gmra.mrb[12].mxu0 %v612_v11 }
 0x113   :  { %3958 = vmatpush3.bf16.msra.mxu0 %v3955_v34 }
 0x1cc   :  { %v3702_v16 = vpop.f32.mrb[8].mxu0 }
 0x1cd   :  { %v906_v17 = vpop.f32.mrb[9].mxu0 }
 0x1d8   :  { %v831_v18 = vpop.f32.mrb[6].mxu1 }
 0x1d9   :  { %v907_v20 = vadd.f32 %v906_v17, %v831_v18  ;;  %v833_v21 = vpop.f32.mrb[7].mxu1 }
 0x1db   :  { %3710 = vmatprep.mubr.msk.f32.mxu1 %vm1220_vm2, %v907_v20 }
 0x1dc   :  { %v836_v19 = vpop.f32.mrb[8].mxu1 }
 0x1dd   :  { %v912_v22 = vadd.f32 %v3702_v16, %v836_v19  ;;  %v838_v23 = vpop.f32.mrb[9].mxu1 }
 0x1df   :  { %3711 = vmatmul.mubr.msk.f32.vlgmr.msra.gmra.mrb[12].mxu1 %vm1220_vm2, %v912_v22 }
 0x1e0   :  { %v1131_v24 = vpop.f32.mrb[10].mxu0  ;;  %v3707_v26 = vpop.f32.mrb[10].mxu1 }
 0x1e1   :  { %v1133_v25 = vpop.f32.mrb[11].mxu0  ;;  %v1206_v27 = vpop.f32.mrb[11].mxu1 }
 0x1e2   :  { %v1207_v28 = vadd.f32 %v1206_v27, %v1131_v24  ;;  %v4594_v25 = vld [vmem:[#allocation2 + $0x40] sm:$0xff] }
 0x1e4   :  { %v1136_v29 = vpop.f32.mrb[12].mxu0  ;;  %3713 = vmatprep.mubr.msk.f32.mxu1 %vm1220_vm2, %v1207_v28 }
 0x1e5   :  { %v1212_v30 = vadd.f32 %v3707_v26, %v1136_v29  ;;  %v1138_v31 = vpop.f32.mrb[13].mxu0  ;;  %v4596_v26 = vld [vmem:[#allocation2 + $0x38] sm:$0xff] }
 0x1e6   :  { %v4600_v31 = vld [vmem:[#allocation2 + $0x50] sm:$0xff] }
 0x1e7   :  { %3714 = vmatmul.mubr.msk.f32.gmra.mrb[14].mxu1 %vm1220_vm2, %v1212_v30 }
 0x2b2   :  { %v3712_v37 = vpop.f32.mrb[12].mxu1 }
 0x2b3   :  { %v4520_v38 = vadd.f32 %v3712_v37, %v1217_v35  ;;  %v1299_v39 = vpop.f32.mrb[13].mxu1 }
 0x2b4   :  { %v4522_v40 = vadd.f32 %v1299_v39, %v1216_v36 }
 0x2b5   :  { %v1319_v42 = vmax.f32 %v4520_v38, 0.0 }
 0x2b6   :  { %v1318_v41 = vmax.f32 %v4522_v40, 0.0 }
 0x2b8   :  { %3724 = vmatprep.mubr.msk.f32.mxu0 %vm1338_vm3, %v1318_v41 }
 0x2b9   :  { %3725 = vmatmul.mubr.msk.f32.vlgmr.msra.gmra.mrb[14].mxu0 %vm1338_vm3, %v1319_v42 }
 0x2ba   :  { %v3715_v45 = vpop.f32.mrb[14].mxu1 }
 0x2bb   :  { %v4532_v46 = vadd.f32 %v3715_v45, %v1219_v43  ;;  %v1309_v47 = vpop.f32.mrb[15].mxu1  ;;  %v4608_v43 = vld [vmem:[#allocation2 + $0x60] sm:$0xff] }
 0x2bc   :  { %v4534_v48 = vadd.f32 %v1309_v47, %v1218_v44  ;;  %v4610_v44 = vld [vmem:[#allocation2 + $0x58] sm:$0xff] }
 0x2bd   :  { %v1321_v50 = vmax.f32 %v4532_v46, 0.0 }
 0x2be   :  { %v1320_v49 = vmax.f32 %v4534_v48, 0.0 }
 0x2c0   :  { %3727 = vmatprep.mubr.msk.f32.mxu0 %vm1338_vm3, %v1320_v49 }
 0x2c1   :  { %3728 = vmatmul.mubr.msk.f32.gmra.mrb[16].mxu0 %vm1338_vm3, %v1321_v50 }
 0x38c   :  { %v3726_v53 = vpop.f32.mrb[14].mxu0 }
 0x38d   :  { %v1423_v54 = vadd.f32 %v3726_v53, %v1335_v51  ;;  %v1417_v55 = vpop.f32.mrb[15].mxu0 }
 0x38e   :  { %v1418_v56 = vadd.f32 %v1417_v55, %v1334_v52  ;;  %v4616_v55 = vld [vmem:[#allocation2 + $0x70] sm:$0xff] }
 0x38f   :  { %1442 = vrot.lane.b32.xlu1 %v1423_v54, %s4366_s1 }
 0x390   :  { %1440 = vrot.lane.b32.xlu0 %v1418_v56, %s4366_s1  ;;  %3746 = vmatprep.mubr.msk.f32.mxu1 %vm1464_vm4, %v1418_v56  ;;  %v4551_v1 = vpack.i.bf16 %v1423_v54, %v1418_v56  ;;  %v4618_v56 = vld [vmem:[#allocation2 + $0x68] sm:$0xff] }
 0x394   :  { %v3729_v59 = vpop.f32.mrb[16].mxu0 }
 0x395   :  { %v1433_v60 = vadd.f32 %v3729_v59, %v1337_v57  ;;  %v1427_v61 = vpop.f32.mrb[17].mxu0 }
 0x396   :  { %v1428_v62 = vadd.f32 %v1427_v61, %v1336_v58 }
 0x397   :  { %1446 = vrot.lane.b32.xlu0 %v1433_v60, %s4366_s1 }
 0x398   :  { %1444 = vrot.lane.b32.xlu1 %v1428_v62, %s4366_s1  ;;  %v4549_v63 = vpack.i.bf16 %v1433_v60, %v1428_v62 }
 0x39b   :  { %4136 = vrot.lane.b32.xlu0 %v4549_v63, %s4367_s11 }
 0x39c   :  { %4131 = vrot.lane.b32.xlu1 %v4551_v1, %s4367_s11 }
 0x401   :  { %v1443_v2 = vpop.permute.xlu1 %1442 }
 0x402   :  { %v1441_v3 = vpop.permute.xlu0 %1440 }
 0x403   :  { %v4557_v4 = vpack.i.bf16 %v1443_v2, %v1441_v3 }
 0x405   :  { %4141 = vrot.lane.b32.xlu1 %v4557_v4, %s4367_s11 }
 0x409   :  { %v1447_v5 = vpop.permute.xlu0 %1446 }
 0x40a   :  { %v1445_v6 = vpop.permute.xlu1 %1444 }
 0x40b   :  { %v4561_v7 = vpack.i.bf16 %v1447_v5, %v1445_v6 }
 0x40d   :  { %v4137_v8 = vpop.permute.xlu0 %4136  ;;  %4146 = vrot.lane.b32.xlu0 %v4561_v7, %s4367_s11 }
 0x40e   :  { %v4132_v9 = vpop.permute.xlu1 %4131  ;;  %v4139_v10 = vunpack.i.h.bf16 %v4137_v8  ;;  %v4138_v11 = vunpack.i.l.bf16 %v4137_v8 }
 0x40f   :  { %v4134_v12 = vunpack.i.h.bf16 %v4132_v9  ;;  %v4133_v13 = vunpack.i.l.bf16 %v4132_v9 }
 0x410   :  { %v3965_v16 = vpack.c.bf16 %v4139_v10, %v4138_v11 }
 0x411   :  { %v3959_v15 = vpack.c.bf16 %v4134_v12, %v4133_v13 }
 0x413   :  { %3961 = vmatprep.subr.msk.bf16.mxu1 %vm4567_vm5, %v3959_v15 }
 0x414   :  { %3964 = vmatpush3.bf16.xpose.msk.msra.mxu1 %vm4567_vm5, %v3959_v15 }
 0x415   :  { %3967 = vmatprep.subr.msk.bf16.mxu1 %vm4567_vm5, %v3965_v16 }
 0x41c   :  { %3970 = vmatpush3.bf16.xpose.msk.msra.mxu1 %vm4567_vm5, %v3965_v16 }
 0x477   :  { %v4142_v17 = vpop.permute.xlu1 %4141 }
 0x478   :  { %v4144_v18 = vunpack.i.h.bf16 %v4142_v17  ;;  %v4143_v20 = vunpack.i.l.bf16 %v4142_v17 }
 0x47a   :  { %v3971_v21 = vpack.c.bf16 %v4144_v18, %v4143_v20 }
 0x47c   :  { %3973 = vmatprep.subr.msk.bf16.mxu1 %vm4567_vm5, %v3971_v21 }
 0x47d   :  { %3976 = vmatpush3.bf16.xpose.msk.msra.mxu1 %vm4567_vm5, %v3971_v21 }
 0x47f   :  { %v4147_v19 = vpop.permute.xlu0 %4146 }
 0x480   :  { %v4149_v22 = vunpack.i.h.bf16 %v4147_v19  ;;  %v4148_v23 = vunpack.i.l.bf16 %v4147_v19 }
 0x482   :  { %v3977_v24 = vpack.c.bf16 %v4149_v22, %v4148_v23 }
 0x484   :  { %3979 = vmatprep.subr.msk.bf16.mxu1 %vm4567_vm5, %v3977_v24 }
 0x485   :  { %3982 = vmatpush3.bf16.xpose.msk.msra.mxu1 %vm4567_vm5, %v3977_v24 }
 0x48c   :  { %3747 = vmatmul.mubr.msk.f32.vlgmr.msra.gmra.mrb[16].mxu1 %vm1464_vm4, %v1423_v54 }
 0x48d   :  { %3749 = vmatprep.mubr.msk.f32.mxu1 %vm1464_vm4, %v1428_v62 }
 0x490   :  { %3750 = vmatmul.mubr.msk.f32.gmra.mrb[18].mxu1 %vm1464_vm4, %v1433_v60 }
 0x491   :  { %3752 = vmatprep.mubr.msk.f32.mxu1 %vm1464_vm4, %v1441_v3 }
 0x494   :  { %3753 = vmatmul.mubr.msk.f32.gmra.mrb[20].mxu1 %vm1464_vm4, %v1443_v2 }
 0x495   :  { %3755 = vmatprep.mubr.msk.f32.mxu1 %vm1464_vm4, %v1445_v6 }
 0x498   :  { %3756 = vmatmul.mubr.msk.f32.gmra.mrb[22].mxu1 %vm1464_vm4, %v1447_v5 }
 0x55f   :  { %v3748_v27 = vpop.f32.mrb[16].mxu1 }
 0x560   :  { %v1569_v28 = vadd.f32 %v3748_v27, %v4594_v25  ;;  %v1563_v29 = vpop.f32.mrb[17].mxu1 }
 0x561   :  { %v1564_v30 = vadd.f32 %v1563_v29, %v4596_v26 }
 0x562   :  { %v1606_v32 = vsel %vm1602_vm6, %v1569_v28, -inf }
 0x563   :  { %1607 = vmax.xlane.f32.xlu0 %v1606_v32  ;;  %v3751_v34 = vpop.f32.mrb[18].mxu1  ;;  %v1603_v35 = vsel %vm1602_vm6, %v1564_v30, -inf }
 0x564   :  { %v1579_v36 = vadd.f32 %v3751_v34, %v4600_v31  ;;  %v1573_v37 = vpop.f32.mrb[19].mxu1  ;;  %1604 = vmax.xlane.f32.xlu1 %v1603_v35 }
 0x565   :  { %v1574_v39 = vadd.f32 %v1573_v37, %v4603_v33 }
 0x566   :  { %v1612_v45 = vsel %vm1602_vm6, %v1579_v36, -inf }
 0x567   :  { %v3754_v47 = vpop.f32.mrb[20].mxu1  ;;  %v1609_v51 = vsel %vm1602_vm6, %v1574_v39, -inf }
 0x568   :  { %v1589_v52 = vadd.f32 %v3754_v47, %v4608_v43  ;;  %v1583_v53 = vpop.f32.mrb[21].mxu1  ;;  %1610 = vmax.xlane.f32.xlu0 %v1609_v51  ;;  %1613 = vmax.xlane.f32.xlu1 %v1612_v45 }
 0x569   :  { %v1584_v54 = vadd.f32 %v1583_v53, %v4610_v44 }
 0x56a   :  { %v1618_v57 = vsel %vm1602_vm6, %v1589_v52, -inf }
 0x56b   :  { %v3757_v58 = vpop.f32.mrb[22].mxu1  ;;  %v1615_v59 = vsel %vm1602_vm6, %v1584_v54, -inf }
 0x56c   :  { %v1599_v60 = vadd.f32 %v3757_v58, %v4616_v55  ;;  %v1593_v61 = vpop.f32.mrb[23].mxu1  ;;  %1616 = vmax.xlane.f32.xlu0 %v1615_v59  ;;  %1619 = vmax.xlane.f32.xlu1 %v1618_v57 }
 0x56d   :  { %v1594_v62 = vadd.f32 %v1593_v61, %v4618_v56 }
 0x56e   :  { %v1624_v2 = vsel %vm1602_vm6, %v1599_v60, -inf }
 0x56f   :  { %v1621_v3 = vsel %vm1602_vm6, %v1594_v62, -inf }
 0x570   :  { %1622 = vmax.xlane.f32.xlu0 %v1621_v3  ;;  %1625 = vmax.xlane.f32.xlu1 %v1624_v2 }
 0x581   :  { %4156 = vrot.lane.b32.xlu1 %v4549_v63, %s4368_s0 }
 0x586   :  { %4151 = vrot.lane.b32.xlu0 %v4551_v1, %s4368_s0 }
 0x5f0   :  { %v1608_v5 = vpop.xlane.xlu0 %1607 }
 0x5f1   :  { %v1628_v6 = vsub.f32 %v1569_v28, %v1608_v5  ;;  %v1605_v8 = vpop.xlane.xlu1 %1604 }
 0x5f2   :  { %v1627_v9 = vsub.f32 %v1564_v30, %v1605_v8 }
 0x5f3   :  { %v1637_v10 = vmul.f32 1.442695, %v1628_v6 }
 0x5f4   :  { %v1635_v11 = vmul.f32 1.442695, %v1627_v9 }
 0x5f5   :  { %4217 = vpow2.f32 %v1637_v10  ;;  %v1611_v12 = vpop.xlane.xlu0 %1610  ;;  %v1614_v13 = vpop.xlane.xlu1 %1613 }
 0x5f6   :  { %4219 = vpow2.f32 %v1635_v11  ;;  %v1629_v15 = vsub.f32 %v1574_v39, %v1611_v12  ;;  %v1630_v16 = vsub.f32 %v1579_v36, %v1614_v13 }
 0x5f8   :  { %v1639_v17 = vmul.f32 1.442695, %v1629_v15  ;;  %v1641_v18 = vmul.f32 1.442695, %v1630_v16 }
 0x5f9   :  { %v1617_v20 = vpop.xlane.xlu0 %1616  ;;  %v1620_v21 = vpop.xlane.xlu1 %1619 }
 0x5fa   :  { %4221 = vpow2.f32 %v1639_v17  ;;  %v1631_v63 = vsub.f32 %v1584_v54, %v1617_v20  ;;  %v1632_v19 = vsub.f32 %v1589_v52, %v1620_v21 }
 0x5fb   :  { %4223 = vpow2.f32 %v1641_v18 }
 0x5fc   :  { %v1643_v1 = vmul.f32 1.442695, %v1631_v63  ;;  %v1645_v22 = vmul.f32 1.442695, %v1632_v19 }
 0x5fd   :  { %v1623_v23 = vpop.xlane.xlu0 %1622  ;;  %v1626_v24 = vpop.xlane.xlu1 %1625 }
 0x5fe   :  { %4225 = vpow2.f32 %v1643_v1  ;;  %v1633_v27 = vsub.f32 %v1594_v62, %v1623_v23  ;;  %v1634_v28 = vsub.f32 %v1599_v60, %v1626_v24 }
 0x5ff   :  { %v4630_v29 = vpop.eup %4217  ;;  %4227 = vpow2.f32 %v1645_v22 }
 0x600   :  { %v4220_v30 = vpop.eup %4219  ;;  %v1647_v32 = vmul.f32 1.442695, %v1633_v27  ;;  %v1649_v34 = vmul.f32 1.442695, %v1634_v28  ;;  %v1654_v35 = vsel %vm1602_vm6, %v4630_v29, 0.0 }
 0x601   :  { %v4152_v36 = vpop.permute.xlu0 %4151  ;;  %1655 = vadd.xlane.f32.xlu1 %v1654_v35  ;;  %v4157_v37 = vpop.permute.xlu1 %4156  ;;  %v1651_v39 = vsel %vm1602_vm6, %v4220_v30, 0.0 }
 0x602   :  { %4229 = vpow2.f32 %v1647_v32  ;;  %v4154_v45 = vunpack.i.h.bf16 %v4152_v36  ;;  %v4153_v47 = vunpack.i.l.bf16 %v4152_v36  ;;  %v4159_v51 = vunpack.i.h.bf16 %v4157_v37  ;;  %1652 = vadd.xlane.f32.xlu0 %v1651_v39 }
 0x603   :  { %4231 = vpow2.f32 %v1649_v34  ;;  %v4158_v52 = vunpack.i.l.bf16 %v4157_v37 }
 0x604   :  { %v4222_v53 = vpop.eup %4221  ;;  %v3983_v54 = vpack.c.bf16 %v4154_v45, %v4153_v47 }
 0x605   :  { %v4635_v57 = vpop.eup %4223  ;;  %v1657_v58 = vsel %vm1602_vm6, %v4222_v53, 0.0  ;;  %v3987_v59 = vpack.c.bf16 %v4159_v51, %v4158_v52 }
 0x606   :  { %3984 = vmatprep.subr.bf16.mxu0 %v3983_v54  ;;  %1658 = vadd.xlane.f32.xlu0 %v1657_v58  ;;  %v1660_v60 = vsel %vm1602_vm6, %v4635_v57, 0.0 }
 0x607   :  { %1661 = vadd.xlane.f32.xlu1 %v1660_v60  ;;  %3986 = vmatpush3.bf16.msra.mxu0 %v3983_v54  ;;  %v1865_v54 = vld [vmem:[#allocation2 + $0xe8] sm:$0xff] }
 0x608   :  { %v4226_v61 = vpop.eup %4225  ;;  %3988 = vmatprep.subr.bf16.mxu0 %v3987_v59 }
 0x609   :  { %v4228_v62 = vpop.eup %4227  ;;  %v1663_v2 = vsel %vm1602_vm6, %v4226_v61, 0.0 }
 0x60a   :  { %1664 = vadd.xlane.f32.xlu0 %v1663_v2  ;;  %v1666_v3 = vsel %vm1602_vm6, %v4228_v62, 0.0 }
 0x60b   :  { %1667 = vadd.xlane.f32.xlu1 %v1666_v3  ;;  %3990 = vmatpush3.bf16.msra.mxu0 %v3987_v59  ;;  %v1867_v59 = vld [vmem:[#allocation2 + $0xf8] sm:$0xff] }
 0x60c   :  { %v4230_v5 = vpop.eup %4229 }
 0x60d   :  { %v4232_v6 = vpop.eup %4231  ;;  %v1669_v8 = vsel %vm1602_vm6, %v4230_v5, 0.0 }
 0x60e   :  { %v1672_v9 = vsel %vm1602_vm6, %v4232_v6, 0.0 }
 0x60f   :  { %1670 = vadd.xlane.f32.xlu1 %v1669_v8  ;;  %1673 = vadd.xlane.f32.xlu0 %v1672_v9 }
 0x620   :  { %4166 = vrot.lane.b32.xlu1 %v4561_v7, %s4368_s0 }
 0x625   :  { %4161 = vrot.lane.b32.xlu0 %v4557_v4, %s4368_s0 }
 0x68e   :  { %v1656_v10 = vpop.xlane.xlu1 %1655 }
 0x68f   :  { %v1653_v11 = vpop.xlane.xlu0 %1652 }
 0x690   :  { %4233 = vrcp.f32 %v1653_v11 }
 0x691   :  { %4235 = vrcp.f32 %v1656_v10 }
 0x693   :  { %v1659_v12 = vpop.xlane.xlu0 %1658 }
 0x694   :  { %v1662_v13 = vpop.xlane.xlu1 %1661  ;;  %4237 = vrcp.f32 %v1659_v12 }
 0x695   :  { %4239 = vrcp.f32 %v1662_v13 }
 0x697   :  { %v1665_v15 = vpop.xlane.xlu0 %1664 }
 0x698   :  { %v1668_v16 = vpop.xlane.xlu1 %1667  ;;  %4241 = vrcp.f32 %v1665_v15 }
 0x699   :  { %4243 = vrcp.f32 %v1668_v16 }
 0x69a   :  { %v4234_v17 = vpop.eup %4233 }
 0x69b   :  { %v1683_v18 = vmul.f32 %v4234_v17, %v4220_v30  ;;  %v4236_v27 = vpop.eup %4235 }
 0x69c   :  { %v1674_v20 = vpop.xlane.xlu0 %1673  ;;  %v1671_v21 = vpop.xlane.xlu1 %1670  ;;  %v1684_v30 = vmul.f32 %v4236_v27, %v4630_v29 }
 0x69d   :  { %3774 = vmatprep.mubr.msk.f32.mxu0 %vm1602_vm6, %v1683_v18  ;;  %4245 = vrcp.f32 %v1671_v21  ;;  %v1868_v21 = vld [vmem:[#allocation2 + $0x100] sm:$0xff] }
 0x69e   :  { %v4238_v28 = vpop.eup %4237  ;;  %4247 = vrcp.f32 %v1674_v20  ;;  %v1869_v20 = vld [vmem:[#allocation2 + $0x108] sm:$0xff] }
 0x69f   :  { %v4240_v32 = vpop.eup %4239  ;;  %v1685_v34 = vmul.f32 %v4238_v28, %v4222_v53  ;;  %v1864_v53 = vld [vmem:[#allocation2 + $0xe0] sm:$0xff] }
 0x6a0   :  { %v4162_v63 = vpop.permute.xlu0 %4161  ;;  %v4167_v7 = vpop.permute.xlu1 %4166  ;;  %v1686_v36 = vmul.f32 %v4240_v32, %v4635_v57  ;;  %v1866_v57 = vld [vmem:[#allocation2 + $0xf0] sm:$0xff]  ;;  %v3999_v58 = vpack.c.bf16 %v1865_v54, %v1864_v53 }
 0x6a1   :  { %v4164_v19 = vunpack.i.h.bf16 %v4162_v63  ;;  %v4163_v1 = vunpack.i.l.bf16 %v4162_v63  ;;  %v4169_v4 = vunpack.i.h.bf16 %v4167_v7  ;;  %v4168_v22 = vunpack.i.l.bf16 %v4167_v7 }
 0x6a2   :  { %v4242_v35 = vpop.eup %4241  ;;  %v4003_v60 = vpack.c.bf16 %v1867_v59, %v1866_v57 }
 0x6a3   :  { %v3991_v23 = vpack.c.bf16 %v4164_v19, %v4163_v1  ;;  %v3995_v24 = vpack.c.bf16 %v4169_v4, %v4168_v22  ;;  %v4244_v37 = vpop.eup %4243  ;;  %v1687_v39 = vmul.f32 %v4242_v35, %v4226_v61  ;;  %v1871_v4 = vld [vmem:[#allocation2 + $0x118] sm:$0xff]  ;;  %v1870_v22 = vld [vmem:[#allocation2 + $0x110] sm:$0xff] }
 0x6a4   :  { %v1688_v47 = vmul.f32 %v4244_v37, %v4228_v62 }
 0x6a5   :  { %3992 = vmatprep.subr.bf16.mxu0 %v3991_v23 }
 0x6a6   :  { %3994 = vmatpush3.bf16.msra.mxu0 %v3991_v23 }
 0x6a7   :  { %3996 = vmatprep.subr.bf16.mxu0 %v3995_v24  ;;  %v4246_v45 = vpop.eup %4245 }
 0x6a8   :  { %v4248_v51 = vpop.eup %4247  ;;  %v1689_v52 = vmul.f32 %v4246_v45, %v4230_v5 }
 0x6a9   :  { %v1690_v29 = vmul.f32 %v4248_v51, %v4232_v6 }
 0x6aa   :  { %3998 = vmatpush3.bf16.msra.mxu0 %v3995_v24 }
 0x6ab   :  { %4000 = vmatprep.subr.bf16.mxu0 %v3999_v58 }
 0x6ad   :  { %3775 = vmatmul.mubr.msk.f32.vlgmr.msra.gmra.mrb[18].mxu0 %vm1602_vm6, %v1684_v30 }
 0x6ae   :  { %3777 = vmatprep.mubr.msk.f32.mxu0 %vm1602_vm6, %v1685_v34  ;;  %4002 = vmatpush3.bf16.msra.mxu0 %v3999_v58 }
 0x6af   :  { %4004 = vmatprep.subr.bf16.mxu0 %v4003_v60 }
 0x6b1   :  { %3778 = vmatmul.mubr.msk.f32.gmra.mrb[20].mxu0 %vm1602_vm6, %v1686_v36 }
 0x6b2   :  { %3780 = vmatprep.mubr.msk.f32.mxu0 %vm1602_vm6, %v1687_v39  ;;  %4006 = vmatpush3.bf16.msra.mxu0 %v4003_v60 }
 0x6b5   :  { %3781 = vmatmul.mubr.msk.f32.gmra.mrb[22].mxu0 %vm1602_vm6, %v1688_v47 }
 0x6b6   :  { %3783 = vmatprep.mubr.msk.f32.mxu0 %vm1602_vm6, %v1689_v52 }
 0x6b9   :  { %3784 = vmatmul.mubr.msk.f32.gmra.mrb[24].mxu0 %vm1602_vm6, %v1690_v29 }
 0x780   :  { %v3776_v61 = vpop.f32.mrb[18].mxu0 }
 0x781   :  { %v1805_v62 = vpop.f32.mrb[19].mxu0 }
 0x784   :  { %v3779_v2 = vpop.f32.mrb[20].mxu0 }
 0x785   :  { %v1815_v3 = vpop.f32.mrb[21].mxu0 }
 0x788   :  { %v3782_v5 = vpop.f32.mrb[22].mxu0 }
 0x789   :  { %1850 = vrot.lane.b32.xlu0 %v3782_v5, %s4369_s12  ;;  %v1825_v6 = vpop.f32.mrb[23].mxu0 }
 0x78a   :  { %1848 = vrot.lane.b32.xlu1 %v1825_v6, %s4369_s12  ;;  %v2044_v6 = vld [vmem:[#allocation2 + $0x170] sm:$0xff] }
 0x78c   :  { %v3785_v8 = vpop.f32.mrb[24].mxu0 }
 0x78d   :  { %1854 = vrot.lane.b32.xlu0 %v3785_v8, %s4369_s12  ;;  %v1835_v9 = vpop.f32.mrb[25].mxu0  ;;  %v2045_v8 = vld [vmem:[#allocation2 + $0x178] sm:$0xff] }
 0x78e   :  { %1852 = vrot.lane.b32.xlu1 %v1835_v9, %s4369_s12  ;;  %v4011_v9 = vpack.c.bf16 %v2045_v8, %v2044_v6 }
 0x7fb   :  { %v1851_v10 = vpop.permute.xlu0 %1850 }
 0x7fc   :  { %v1849_v11 = vpop.permute.xlu1 %1848  ;;  %v1861_v13 = vsel %vm1464_vm4, %v3776_v61, %v1851_v10  ;;  %v2151_v10 = vld [vmem:[#allocation2 + $0x1a0] sm:$0xff] }
 0x7fd   :  { %v1860_v12 = vsel %vm1464_vm4, %v1805_v62, %v1849_v11  ;;  %v2152_v11 = vld [vmem:[#allocation2 + $0x1a8] sm:$0xff] }
 0x7fe   :  { %3794 = vmatprep.mubr.msk.f32.mxu0 %vm1338_vm3, %v1860_v12  ;;  %v2153_v12 = vld [vmem:[#allocation2 + $0x1b0] sm:$0xff] }
 0x7ff   :  { %3795 = vmatmul.mubr.msk.f32.vlgmr.msra.gmra.mrb[26].mxu0 %vm1338_vm3, %v1861_v13  ;;  %v1855_v15 = vpop.permute.xlu0 %1854  ;;  %v4015_v13 = vpack.c.bf16 %v2152_v11, %v2151_v10 }
 0x800   :  { %v1853_v16 = vpop.permute.xlu1 %1852  ;;  %v1863_v18 = vsel %vm1464_vm4, %v3779_v2, %v1855_v15  ;;  %v2042_v2 = vld [vmem:[#allocation2 + $0x160] sm:$0xff]  ;;  %v2154_v15 = vld [vmem:[#allocation2 + $0x1b8] sm:$0xff] }
 0x801   :  { %v1862_v17 = vsel %vm1464_vm4, %v1815_v3, %v1853_v16  ;;  %v2043_v3 = vld [vmem:[#allocation2 + $0x168] sm:$0xff]  ;;  %v4019_v16 = vpack.c.bf16 %v2154_v15, %v2153_v12  ;;  %4016 = vmatprep.subr.bf16.mxu1 %v4015_v13 }
 0x802   :  { %3797 = vmatprep.mubr.msk.f32.mxu0 %vm1338_vm3, %v1862_v17  ;;  %v4007_v5 = vpack.c.bf16 %v2043_v3, %v2042_v2  ;;  %4018 = vmatpush3.bf16.msra.mxu1 %v4015_v13  ;;  %v2048_v3 = vld [vmem:[#allocation2 + $0x190] sm:$0xff]  ;;  %v2156_v15 = vld [vmem:[#allocation2 + $0x1c8] sm:$0xff] }
 0x803   :  { %3798 = vmatmul.mubr.msk.f32.gmra.mrb[28].mxu0 %vm1338_vm3, %v1863_v18  ;;  %4020 = vmatprep.subr.bf16.mxu1 %v4019_v16 }
 0x804   :  { %4008 = vmatprep.subr.bf16.mxu0 %v4007_v5 }
 0x805   :  { %4010 = vmatpush3.bf16.msra.mxu0 %v4007_v5 }
 0x806   :  { %4012 = vmatprep.subr.bf16.mxu0 %v4011_v9  ;;  %4022 = vmatpush3.bf16.msra.mxu1 %v4019_v16  ;;  %v2155_v16 = vld [vmem:[#allocation2 + $0x1c0] sm:$0xff] }
 0x809   :  { %4014 = vmatpush3.bf16.msra.mxu0 %v4011_v9 }
 0x8d2   :  { %v3796_v63 = vpop.f32.mrb[26].mxu0 }
 0x8d3   :  { %v1956_v7 = vadd.f32 %v3796_v63, %v1869_v20  ;;  %v1950_v19 = vpop.f32.mrb[27].mxu0 }
 0x8d4   :  { %v1951_v1 = vadd.f32 %v1950_v19, %v1868_v21 }
 0x8d5   :  { %v1970_v23 = vadd.f32 %v1956_v7, %v1319_v42 }
 0x8d6   :  { %v3799_v24 = vpop.f32.mrb[28].mxu0  ;;  %v1969_v27 = vadd.f32 %v1951_v1, %v1318_v41 }
 0x8d7   :  { %v1966_v28 = vadd.f32 %v3799_v24, %v1871_v4  ;;  %v1960_v30 = vpop.f32.mrb[29].mxu0  ;;  %v1984_v32 = vsel %vm1338_vm3, %v1970_v23, 0.0 }
 0x8d8   :  { %v1961_v34 = vadd.f32 %v1960_v30, %v1870_v22  ;;  %1985 = vadd.xlane.f32.xlu0 %v1984_v32  ;;  %v1981_v35 = vsel %vm1338_vm3, %v1969_v27, 0.0 }
 0x8d9   :  { %1982 = vadd.xlane.f32.xlu1 %v1981_v35  ;;  %v1972_v36 = vadd.f32 %v1966_v28, %v1321_v50  ;;  %v1974_v28 = vld [vmem:[#allocation2 + $0x128] sm:$0xff] }
 0x8da   :  { %v1971_v38 = vadd.f32 %v1961_v34, %v1320_v49  ;;  %v1973_v34 = vld [vmem:[#allocation2 + $0x120] sm:$0xff] }
 0x8db   :  { %v1990_v42 = vsel %vm1338_vm3, %v1972_v36, 0.0 }
 0x8dc   :  { %v1987_v40 = vsel %vm1338_vm3, %v1971_v38, 0.0 }
 0x8dd   :  { %1988 = vadd.xlane.f32.xlu0 %v1987_v40  ;;  %1991 = vadd.xlane.f32.xlu1 %v1990_v42  ;;  %v1978_v42 = vld [vmem:[#allocation2 + $0x148] sm:$0xff] }
 0x965   :  { %v1986_v41 = vpop.xlane.xlu0 %1985 }
 0x966   :  { %v1995_v37 = vmul.f32 0.03125, %v1986_v41  ;;  %v1983_v39 = vpop.xlane.xlu1 %1982 }
 0x967   :  { %v1994_v45 = vmul.f32 0.03125, %v1983_v39 }
 0x968   :  { %v1999_v47 = vsub.f32 %v1970_v23, %v1995_v37  ;;  %v1975_v37 = vld [vmem:[#allocation2 + $0x130] sm:$0xff] }
 0x969   :  { %v1998_v51 = vsub.f32 %v1969_v27, %v1994_v45 }
 0x96a   :  { %v1989_v52 = vpop.xlane.xlu0 %1988  ;;  %v1992_v29 = vpop.xlane.xlu1 %1991  ;;  %v2003_v53 = vmul.f32 %v1999_v47, %v1999_v47 }
 0x96b   :  { %v1996_v46 = vmul.f32 0.03125, %v1989_v52  ;;  %v1997_v50 = vmul.f32 0.03125, %v1992_v29  ;;  %v2002_v54 = vmul.f32 %v1998_v51, %v1998_v51  ;;  %v1976_v29 = vld [vmem:[#allocation2 + $0x138] sm:$0xff] }
 0x96c   :  { %v2009_v48 = vsel %vm1338_vm3, %v2003_v53, 0.0 }
 0x96d   :  { %v2000_v49 = vsub.f32 %v1971_v38, %v1996_v46  ;;  %v4683_v57 = vsub.f32 %v1972_v36, %v1997_v50  ;;  %2010 = vadd.xlane.f32.xlu1 %v2009_v48  ;;  %v2006_v58 = vsel %vm1338_vm3, %v2002_v54, 0.0  ;;  %v1977_v38 = vld [vmem:[#allocation2 + $0x140] sm:$0xff]  ;;  %v1979_v46 = vld [vmem:[#allocation2 + $0x150] sm:$0xff] }
 0x96e   :  { %2007 = vadd.xlane.f32.xlu0 %v2006_v58 }
 0x96f   :  { %v2004_v59 = vmul.f32 %v2000_v49, %v2000_v49  ;;  %v2005_v60 = vmul.f32 %v4683_v57, %v4683_v57 }
 0x971   :  { %v2012_v61 = vsel %vm1338_vm3, %v2004_v59, 0.0  ;;  %v2015_v62 = vsel %vm1338_vm3, %v2005_v60, 0.0  ;;  %v2047_v59 = vld [vmem:[#allocation2 + $0x188] sm:$0xff] }
 0x972   :  { %2013 = vadd.xlane.f32.xlu0 %v2012_v61  ;;  %2016 = vadd.xlane.f32.xlu1 %v2015_v62 }
 0x9fa   :  { %v2011_v17 = vpop.xlane.xlu1 %2010 }
 0x9fb   :  { %v2019_v18 = vmul.f32 0.03125, %v2011_v17  ;;  %v2008_v20 = vpop.xlane.xlu0 %2007 }
 0x9fc   :  { %v2018_v21 = vmul.f32 0.03125, %v2008_v20 }
 0x9fd   :  { %v2023_v63 = vadd.f32 1e-05, %v2019_v18 }
 0x9fe   :  { %v2022_v7 = vadd.f32 1e-05, %v2018_v21 }
 0x9ff   :  { %4249 = vrsqrt.f32 %v2023_v63  ;;  %v2014_v19 = vpop.xlane.xlu0 %2013  ;;  %v2017_v1 = vpop.xlane.xlu1 %2016  ;;  %v2158_v63 = vld [vmem:[#allocation2 + $0x1d8] sm:$0xff] }
 0xa00   :  { %4251 = vrsqrt.f32 %v2022_v7  ;;  %v2020_v4 = vmul.f32 0.03125, %v2014_v19  ;;  %v2021_v22 = vmul.f32 0.03125, %v2017_v1  ;;  %v2157_v19 = vld [vmem:[#allocation2 + $0x1d0] sm:$0xff] }
 0xa02   :  { %v2024_v23 = vadd.f32 1e-05, %v2020_v4  ;;  %v2025_v24 = vadd.f32 1e-05, %v2021_v22 }
 0xa04   :  { %4253 = vrsqrt.f32 %v2024_v23 }
 0xa05   :  { %4255 = vrsqrt.f32 %v2025_v24 }
 0xa09   :  { %v4250_v27 = vpop.eup %4249 }
 0xa0a   :  { %v4252_v30 = vpop.eup %4251  ;;  %v2031_v32 = vmul.f32 %v4250_v27, %v1999_v47  ;;  %v1980_v47 = vld [vmem:[#allocation2 + $0x158] sm:$0xff] }
 0xa0b   :  { %v2030_v35 = vmul.f32 %v4252_v30, %v1998_v51 }
 0xa0c   :  { %v2035_v36 = vmul.f32 %v2031_v32, %v1974_v28 }
 0xa0d   :  { %v2034_v40 = vmul.f32 %v2030_v35, %v1973_v34 }
 0xa0e   :  { %v4254_v41 = vpop.eup %4253  ;;  %v2039_v53 = vadd.f32 %v2035_v36, %v1978_v42 }
 0xa0f   :  { %v4256_v39 = vpop.eup %4255  ;;  %v2038_v45 = vadd.f32 %v2034_v40, %v1977_v38  ;;  %v2032_v52 = vmul.f32 %v4254_v41, %v2000_v49  ;;  %v2046_v49 = vld [vmem:[#allocation2 + $0x180] sm:$0xff] }
 0xa10   :  { %v2033_v50 = vmul.f32 %v4256_v39, %v4683_v57  ;;  %v2049_v57 = vld [vmem:[#allocation2 + $0x198] sm:$0xff] }
 0xa11   :  { %3808 = vmatprep.mubr.msk.f32.mxu0 %vm1338_vm3, %v2038_v45  ;;  %v2036_v54 = vmul.f32 %v2032_v52, %v1975_v37 }
 0xa12   :  { %3809 = vmatmul.mubr.msk.f32.vlgmr.msra.gmra.mrb[30].mxu0 %vm1338_vm3, %v2039_v53  ;;  %v2037_v51 = vmul.f32 %v2033_v50, %v1976_v29 }
 0xa13   :  { %v2040_v48 = vadd.f32 %v2036_v54, %v1979_v46 }
 0xa14   :  { %v2041_v58 = vadd.f32 %v2037_v51, %v1980_v47 }
 0xa15   :  { %3811 = vmatprep.mubr.msk.f32.mxu0 %vm1338_vm3, %v2040_v48 }
 0xa16   :  { %3812 = vmatmul.mubr.msk.f32.gmra.mrb[32].mxu0 %vm1338_vm3, %v2041_v58 }
 0xae5   :  { %v3810_v60 = vpop.f32.mrb[30].mxu0 }
 0xae6   :  { %v2134_v61 = vadd.f32 %v3810_v60, %v2047_v59  ;;  %v2128_v62 = vpop.f32.mrb[31].mxu0 }
 0xae7   :  { %v2129_v2 = vadd.f32 %v2128_v62, %v2046_v49 }
 0xae8   :  { %v2148_v8 = vmax.f32 %v2134_v61, 0.0 }
 0xae9   :  { %v2147_v5 = vmax.f32 %v2129_v2, 0.0  ;;  %v3813_v6 = vpop.f32.mrb[32].mxu0 }
 0xaea   :  { %v2144_v9 = vadd.f32 %v3813_v6, %v2049_v57  ;;  %v2138_v10 = vpop.f32.mrb[33].mxu0  ;;  %v2332_v57 = vld [vmem:[#allocation2 + $0x220] sm:$0xff]  ;;  %v2334_v6 = vld [vmem:[#allocation2 + $0x230] sm:$0xff] }
 0xaeb   :  { %v2139_v11 = vadd.f32 %v2138_v10, %v2048_v3  ;;  %3822 = vmatprep.mubr.msk.f32.mxu1 %vm1338_vm3, %v2147_v5  ;;  %v2333_v3 = vld [vmem:[#allocation2 + $0x228] sm:$0xff] }
 0xaec   :  { %3823 = vmatmul.mubr.msk.f32.vlgmr.msra.gmra.mrb[24].mxu1 %vm1338_vm3, %v2148_v8  ;;  %v2150_v13 = vmax.f32 %v2144_v9, 0.0  ;;  %v4023_v5 = vpack.c.bf16 %v2333_v3, %v2332_v57  ;;  %v2335_v8 = vld [vmem:[#allocation2 + $0x238] sm:$0xff] }
 0xaed   :  { %v2149_v12 = vmax.f32 %v2139_v11, 0.0  ;;  %v4027_v9 = vpack.c.bf16 %v2335_v8, %v2334_v6 }
 0xaee   :  { %4024 = vmatprep.subr.bf16.mxu0 %v4023_v5 }
 0xaef   :  { %3825 = vmatprep.mubr.msk.f32.mxu1 %vm1338_vm3, %v2149_v12  ;;  %4026 = vmatpush3.bf16.msra.mxu0 %v4023_v5 }
 0xaf0   :  { %3826 = vmatmul.mubr.msk.f32.gmra.mrb[26].mxu1 %vm1338_vm3, %v2150_v13  ;;  %4028 = vmatprep.subr.bf16.mxu0 %v4027_v9 }
 0xaf3   :  { %4030 = vmatpush3.bf16.msra.mxu0 %v4027_v9 }
 0xbbf   :  { %v3824_v17 = vpop.f32.mrb[24].mxu1 }
 0xbc0   :  { %v2243_v18 = vadd.f32 %v3824_v17, %v2156_v15  ;;  %v2237_v20 = vpop.f32.mrb[25].mxu1 }
 0xbc1   :  { %v2238_v21 = vadd.f32 %v2237_v20, %v2155_v16 }
 0xbc2   :  { %v2257_v7 = vmax.f32 %v2243_v18, 0.0 }
 0xbc3   :  { %v2256_v1 = vmax.f32 %v2238_v21, 0.0  ;;  %v3827_v4 = vpop.f32.mrb[26].mxu1 }
 0xbc4   :  { %v2253_v22 = vadd.f32 %v3827_v4, %v2158_v63  ;;  %v2247_v23 = vpop.f32.mrb[27].mxu1  ;;  %v2261_v24 = vadd.f32 %v2257_v7, %v2039_v53 }
 0xbc5   :  { %v2248_v27 = vadd.f32 %v2247_v23, %v2157_v19  ;;  %v2260_v28 = vadd.f32 %v2256_v1, %v2038_v45  ;;  %v2265_v1 = vld [vmem:[#allocation2 + $0x1e8] sm:$0xff]  ;;  %v2264_v23 = vld [vmem:[#allocation2 + $0x1e0] sm:$0xff] }
 0xbc6   :  { %v2259_v30 = vmax.f32 %v2253_v22, 0.0  ;;  %v2275_v32 = vsel %vm1338_vm3, %v2261_v24, 0.0 }
 0xbc7   :  { %v2258_v34 = vmax.f32 %v2248_v27, 0.0  ;;  %2276 = vadd.xlane.f32.xlu1 %v2275_v32  ;;  %v2272_v35 = vsel %vm1338_vm3, %v2260_v28, 0.0  ;;  %v2269_v32 = vld [vmem:[#allocation2 + $0x208] sm:$0xff] }
 0xbc8   :  { %2273 = vadd.xlane.f32.xlu0 %v2272_v35  ;;  %v2263_v36 = vadd.f32 %v2259_v30, %v2041_v58  ;;  %v2267_v35 = vld [vmem:[#allocation2 + $0x1f8] sm:$0xff] }
 0xbc9   :  { %v2262_v38 = vadd.f32 %v2258_v34, %v2040_v48 }
 0xbca   :  { %v2281_v42 = vsel %vm1338_vm3, %v2263_v36, 0.0 }
 0xbcb   :  { %2282 = vadd.xlane.f32.xlu1 %v2281_v42  ;;  %v2278_v40 = vsel %vm1338_vm3, %v2262_v38, 0.0 }
 0xbcc   :  { %2279 = vadd.xlane.f32.xlu0 %v2278_v40 }
 0xc54   :  { %v2277_v41 = vpop.xlane.xlu1 %2276 }
 0xc55   :  { %v2285_v37 = vmul.f32 0.03125, %v2277_v41  ;;  %v2274_v39 = vpop.xlane.xlu0 %2273 }
 0xc56   :  { %v2284_v45 = vmul.f32 0.03125, %v2274_v39  ;;  %v2270_v39 = vld [vmem:[#allocation2 + $0x210] sm:$0xff] }
 0xc57   :  { %v2289_v52 = vsub.f32 %v2261_v24, %v2285_v37 }
 0xc58   :  { %v2288_v29 = vsub.f32 %v2260_v28, %v2284_v45  ;;  %v2283_v53 = vpop.xlane.xlu1 %2282  ;;  %v2268_v28 = vld [vmem:[#allocation2 + $0x200] sm:$0xff] }
 0xc59   :  { %v2287_v46 = vmul.f32 0.03125, %v2283_v53  ;;  %v2280_v50 = vpop.xlane.xlu0 %2279  ;;  %v2293_v54 = vmul.f32 %v2289_v52, %v2289_v52 }
 0xc5a   :  { %v2286_v47 = vmul.f32 0.03125, %v2280_v50  ;;  %v2292_v51 = vmul.f32 %v2288_v29, %v2288_v29  ;;  %v2337_v50 = vld [vmem:[#allocation2 + $0x248] sm:$0xff] }
 0xc5b   :  { %v2291_v58 = vsub.f32 %v2263_v36, %v2287_v46  ;;  %v2299_v48 = vsel %vm1338_vm3, %v2293_v54, 0.0  ;;  %v2336_v54 = vld [vmem:[#allocation2 + $0x240] sm:$0xff] }
 0xc5c   :  { %v2290_v59 = vsub.f32 %v2262_v38, %v2286_v47  ;;  %2300 = vadd.xlane.f32.xlu1 %v2299_v48  ;;  %v2296_v49 = vsel %vm1338_vm3, %v2292_v51, 0.0  ;;  %v2266_v38 = vld [vmem:[#allocation2 + $0x1f0] sm:$0xff] }
 0xc5d   :  { %2297 = vadd.xlane.f32.xlu0 %v2296_v49  ;;  %v2295_v60 = vmul.f32 %v2291_v58, %v2291_v58  ;;  %v2338_v49 = vld [vmem:[#allocation2 + $0x250] sm:$0xff] }
 0xc5e   :  { %v2294_v61 = vmul.f32 %v2290_v59, %v2290_v59 }
 0xc5f   :  { %v2305_v62 = vsel %vm1338_vm3, %v2295_v60, 0.0 }
 0xc60   :  { %2306 = vadd.xlane.f32.xlu1 %v2305_v62  ;;  %v2302_v2 = vsel %vm1338_vm3, %v2294_v61, 0.0 }
 0xc61   :  { %2303 = vadd.xlane.f32.xlu0 %v2302_v2 }
 0xce9   :  { %v2301_v10 = vpop.xlane.xlu1 %2300 }
 0xcea   :  { %v2309_v11 = vmul.f32 0.03125, %v2301_v10  ;;  %v2298_v12 = vpop.xlane.xlu0 %2297 }
 0xceb   :  { %v2308_v13 = vmul.f32 0.03125, %v2298_v12 }
 0xcec   :  { %v2313_v15 = vadd.f32 1e-05, %v2309_v11 }
 0xced   :  { %v2312_v16 = vadd.f32 1e-05, %v2308_v13  ;;  %v2307_v17 = vpop.xlane.xlu1 %2306 }
 0xcee   :  { %4257 = vrsqrt.f32 %v2313_v15  ;;  %v2311_v18 = vmul.f32 0.03125, %v2307_v17  ;;  %v2304_v20 = vpop.xlane.xlu0 %2303 }
 0xcef   :  { %4259 = vrsqrt.f32 %v2312_v16  ;;  %v2310_v21 = vmul.f32 0.03125, %v2304_v20 }
 0xcf0   :  { %v2315_v63 = vadd.f32 1e-05, %v2311_v18 }
 0xcf1   :  { %v2314_v7 = vadd.f32 1e-05, %v2310_v21 }
 0xcf2   :  { %4261 = vrsqrt.f32 %v2315_v63 }
 0xcf3   :  { %4263 = vrsqrt.f32 %v2314_v7 }
 0xcf8   :  { %v4258_v19 = vpop.eup %4257 }
 0xcf9   :  { %v4260_v4 = vpop.eup %4259  ;;  %v2321_v22 = vmul.f32 %v4258_v19, %v2289_v52 }
 0xcfa   :  { %v2320_v24 = vmul.f32 %v4260_v4, %v2288_v29  ;;  %v2271_v29 = vld [vmem:[#allocation2 + $0x218] sm:$0xff] }
 0xcfb   :  { %v2325_v27 = vmul.f32 %v2321_v22, %v2265_v1 }
 0xcfc   :  { %v4262_v30 = vpop.eup %4261  ;;  %v2324_v34 = vmul.f32 %v2320_v24, %v2264_v23 }
 0xcfd   :  { %v4264_v36 = vpop.eup %4263  ;;  %v2323_v42 = vmul.f32 %v4262_v30, %v2291_v58  ;;  %v4709_v37 = vadd.f32 %v2325_v27, %v2269_v32 }
 0xcfe   :  { %v4707_v40 = vadd.f32 %v2324_v34, %v2268_v28  ;;  %v2322_v41 = vmul.f32 %v4264_v36, %v2290_v59  ;;  %v2339_v59 = vld [vmem:[#allocation2 + $0x258] sm:$0xff] }
 0xcff   :  { %v2327_v45 = vmul.f32 %v2323_v42, %v2267_v35 }
 0xd00   :  { %3836 = vmatprep.mubr.msk.f32.mxu0 %vm1338_vm3, %v4707_v40  ;;  %v2326_v52 = vmul.f32 %v2322_v41, %v2266_v38 }
 0xd01   :  { %3837 = vmatmul.mubr.msk.f32.vlgmr.msra.gmra.mrb[34].mxu0 %vm1338_vm3, %v4709_v37  ;;  %v4717_v46 = vadd.f32 %v2327_v45, %v2271_v29 }
 0xd02   :  { %v4715_v53 = vadd.f32 %v2326_v52, %v2270_v39 }
 0xd04   :  { %3839 = vmatprep.mubr.msk.f32.mxu0 %vm1338_vm3, %v4715_v53 }
 0xd05   :  { %3840 = vmatmul.mubr.msk.f32.gmra.mrb[36].mxu0 %vm1338_vm3, %v4717_v46 }
 0xdd4   :  { %v3838_v47 = vpop.f32.mrb[34].mxu0 }
 0xdd5   :  { %v2424_v51 = vadd.f32 %v3838_v47, %v2337_v50  ;;  %v2418_v58 = vpop.f32.mrb[35].mxu0 }
 0xdd6   :  { %v2419_v48 = vadd.f32 %v2418_v58, %v2336_v54 }
 0xdd7   :  { %2443 = vrot.lane.b32.xlu1 %v2424_v51, %s4366_s1 }
 0xdd8   :  { %2441 = vrot.lane.b32.xlu0 %v2419_v48, %s4366_s1  ;;  %v3841_v60 = vpop.f32.mrb[36].mxu0  ;;  %3858 = vmatprep.mubr.msk.f32.mxu1 %vm1464_vm4, %v2419_v48  ;;  %v4730_v3 = vpack.i.bf16 %v2424_v51, %v2419_v48 }
 0xdd9   :  { %v2434_v61 = vadd.f32 %v3841_v60, %v2339_v59  ;;  %v2428_v62 = vpop.f32.mrb[37].mxu0 }
 0xdda   :  { %v2429_v2 = vadd.f32 %v2428_v62, %v2338_v49 }
 0xddc   :  { %2447 = vrot.lane.b32.xlu0 %v2434_v61, %s4366_s1  ;;  %2445 = vrot.lane.b32.xlu1 %v2429_v2, %s4366_s1  ;;  %v4728_v57 = vpack.i.bf16 %v2434_v61, %v2429_v2 }
 0xde0   :  { %4176 = vrot.lane.b32.xlu0 %v4728_v57, %s4367_s11  ;;  %4171 = vrot.lane.b32.xlu1 %v4730_v3, %s4367_s11 }
 0xe49   :  { %v2444_v5 = vpop.permute.xlu1 %2443 }
 0xe4a   :  { %v2442_v6 = vpop.permute.xlu0 %2441 }
 0xe4b   :  { %v4736_v8 = vpack.i.bf16 %v2444_v5, %v2442_v6 }
 0xe4d   :  { %4181 = vrot.lane.b32.xlu1 %v4736_v8, %s4367_s11 }
 0xe4e   :  { %v2448_v9 = vpop.permute.xlu0 %2447  ;;  %v2446_v10 = vpop.permute.xlu1 %2445 }
 0xe4f   :  { %v4740_v11 = vpack.i.bf16 %v2448_v9, %v2446_v10 }
 0xe51   :  { %4186 = vrot.lane.b32.xlu0 %v4740_v11, %s4367_s11 }
 0xe52   :  { %v4177_v12 = vpop.permute.xlu0 %4176  ;;  %v4172_v13 = vpop.permute.xlu1 %4171 }
 0xe53   :  { %v4179_v15 = vunpack.i.h.bf16 %v4177_v12  ;;  %v4178_v16 = vunpack.i.l.bf16 %v4177_v12  ;;  %v4174_v17 = vunpack.i.h.bf16 %v4172_v13  ;;  %v4173_v18 = vunpack.i.l.bf16 %v4172_v13 }
 0xe55   :  { %v4031_v20 = vpack.c.bf16 %v4174_v17, %v4173_v18  ;;  %v4037_v21 = vpack.c.bf16 %v4179_v15, %v4178_v16 }
 0xe57   :  { %4033 = vmatprep.subr.msk.bf16.mxu1 %vm4567_vm5, %v4031_v20 }
 0xe58   :  { %4036 = vmatpush3.bf16.xpose.msk.msra.mxu1 %vm4567_vm5, %v4031_v20 }
 0xe59   :  { %4039 = vmatprep.subr.msk.bf16.mxu1 %vm4567_vm5, %v4037_v21 }
 0xe60   :  { %4042 = vmatpush3.bf16.xpose.msk.msra.mxu1 %vm4567_vm5, %v4037_v21 }
 0xebf   :  { %v4182_v63 = vpop.permute.xlu1 %4181 }
 0xec0   :  { %v4184_v7 = vunpack.i.h.bf16 %v4182_v63  ;;  %v4183_v19 = vunpack.i.l.bf16 %v4182_v63 }
 0xec2   :  { %v4043_v1 = vpack.c.bf16 %v4184_v7, %v4183_v19 }
 0xec3   :  { %v4187_v4 = vpop.permute.xlu0 %4186 }
 0xec4   :  { %v4189_v22 = vunpack.i.h.bf16 %v4187_v4  ;;  %v4188_v23 = vunpack.i.l.bf16 %v4187_v4  ;;  %4045 = vmatprep.subr.msk.bf16.mxu1 %vm4567_vm5, %v4043_v1 }
 0xec5   :  { %4048 = vmatpush3.bf16.xpose.msk.msra.mxu1 %vm4567_vm5, %v4043_v1 }
 0xec6   :  { %v4049_v24 = vpack.c.bf16 %v4189_v22, %v4188_v23 }
 0xec8   :  { %4051 = vmatprep.subr.msk.bf16.mxu1 %vm4567_vm5, %v4049_v24 }
 0xecd   :  { %4054 = vmatpush3.bf16.xpose.msk.msra.mxu1 %vm4567_vm5, %v4049_v24 }
 0xed4   :  { %3859 = vmatmul.mubr.msk.f32.vlgmr.msra.gmra.mrb[28].mxu1 %vm1464_vm4, %v2424_v51 }
 0xed5   :  { %3861 = vmatprep.mubr.msk.f32.mxu1 %vm1464_vm4, %v2429_v2 }
 0xed8   :  { %3862 = vmatmul.mubr.msk.f32.gmra.mrb[30].mxu1 %vm1464_vm4, %v2434_v61 }
 0xed9   :  { %3864 = vmatprep.mubr.msk.f32.mxu1 %vm1464_vm4, %v2442_v6 }
 0xedc   :  { %3865 = vmatmul.mubr.msk.f32.gmra.mrb[32].mxu1 %vm1464_vm4, %v2444_v5 }
 0xedd   :  { %3867 = vmatprep.mubr.msk.f32.mxu1 %vm1464_vm4, %v2446_v10 }
 0xee0   :  { %3868 = vmatmul.mubr.msk.f32.gmra.mrb[34].mxu1 %vm1464_vm4, %v2448_v9 }
 0xfa7   :  { %v3860_v27 = vpop.f32.mrb[28].mxu1 }
 0xfa8   :  { %v2569_v28 = vadd.f32 %v3860_v27, %v4594_v25  ;;  %v2563_v30 = vpop.f32.mrb[29].mxu1 }
 0xfa9   :  { %v2564_v14 = vadd.f32 %v2563_v30, %v4596_v26 }
 0xfaa   :  { %v2605_v32 = vsel %vm1602_vm6, %v2569_v28, -inf }
 0xfab   :  { %2606 = vmax.xlane.f32.xlu0 %v2605_v32  ;;  %v3863_v34 = vpop.f32.mrb[30].mxu1  ;;  %v2602_v35 = vsel %vm1602_vm6, %v2564_v14, -inf }
 0xfac   :  { %v2579_v36 = vadd.f32 %v3863_v34, %v4600_v31  ;;  %v2573_v38 = vpop.f32.mrb[31].mxu1  ;;  %2603 = vmax.xlane.f32.xlu1 %v2602_v35 }
 0xfad   :  { %v2574_v42 = vadd.f32 %v2573_v38, %v4603_v33 }
 0xfae   :  { %v2611_v41 = vsel %vm1602_vm6, %v2579_v36, -inf }
 0xfaf   :  { %v3866_v39 = vpop.f32.mrb[32].mxu1  ;;  %v2608_v25 = vsel %vm1602_vm6, %v2574_v42, -inf }
 0xfb0   :  { %v2589_v45 = vadd.f32 %v3866_v39, %v4608_v43  ;;  %v2583_v26 = vpop.f32.mrb[33].mxu1  ;;  %2609 = vmax.xlane.f32.xlu0 %v2608_v25  ;;  %2612 = vmax.xlane.f32.xlu1 %v2611_v41 }
 0xfb1   :  { %v2584_v52 = vadd.f32 %v2583_v26, %v4610_v44 }
 0xfb2   :  { %v2617_v29 = vsel %vm1602_vm6, %v2589_v45, -inf }
 0xfb3   :  { %v3869_v50 = vpop.f32.mrb[34].mxu1  ;;  %v2614_v31 = vsel %vm1602_vm6, %v2584_v52, -inf }
 0xfb4   :  { %v2599_v54 = vadd.f32 %v3869_v50, %v4616_v55  ;;  %v2593_v33 = vpop.f32.mrb[35].mxu1  ;;  %2615 = vmax.xlane.f32.xlu0 %v2614_v31  ;;  %2618 = vmax.xlane.f32.xlu1 %v2617_v29 }
 0xfb5   :  { %v2594_v47 = vadd.f32 %v2593_v33, %v4618_v56 }
 0xfb6   :  { %v2623_v51 = vsel %vm1602_vm6, %v2599_v54, -inf }
 0xfb7   :  { %v2620_v43 = vsel %vm1602_vm6, %v2594_v47, -inf }
 0xfb8   :  { %2621 = vmax.xlane.f32.xlu0 %v2620_v43  ;;  %2624 = vmax.xlane.f32.xlu1 %v2623_v51 }
 0xfce   :  { %4191 = vrot.lane.b32.xlu0 %v4730_v3, %s4368_s0 }
0x1038   :  { %v2607_v44 = vpop.xlane.xlu0 %2606 }
0x1039   :  { %v2627_v58 = vsub.f32 %v2569_v28, %v2607_v44  ;;  %v2604_v48 = vpop.xlane.xlu1 %2603 }
0x103a   :  { %v2626_v59 = vsub.f32 %v2564_v14, %v2604_v48 }
0x103b   :  { %v2636_v49 = vmul.f32 1.442695, %v2627_v58 }
0x103c   :  { %v2634_v55 = vmul.f32 1.442695, %v2626_v59 }
0x103d   :  { %4265 = vpow2.f32 %v2636_v49  ;;  %v2610_v60 = vpop.xlane.xlu0 %2609  ;;  %v2613_v61 = vpop.xlane.xlu1 %2612 }
0x103e   :  { %4267 = vpow2.f32 %v2634_v55  ;;  %v2628_v56 = vsub.f32 %v2574_v42, %v2610_v60  ;;  %v2629_v62 = vsub.f32 %v2579_v36, %v2613_v61 }
0x1040   :  { %v2638_v2 = vmul.f32 1.442695, %v2628_v56  ;;  %v2640_v5 = vmul.f32 1.442695, %v2629_v62 }
0x1041   :  { %v2616_v6 = vpop.xlane.xlu0 %2615  ;;  %v2619_v9 = vpop.xlane.xlu1 %2618 }
0x1042   :  { %4269 = vpow2.f32 %v2638_v2  ;;  %v2630_v10 = vsub.f32 %v2584_v52, %v2616_v6  ;;  %v2631_v12 = vsub.f32 %v2589_v45, %v2619_v9 }
0x1043   :  { %4271 = vpow2.f32 %v2640_v5 }
0x1044   :  { %v2642_v3 = vmul.f32 1.442695, %v2630_v10  ;;  %v2644_v13 = vmul.f32 1.442695, %v2631_v12 }
0x1045   :  { %v2622_v15 = vpop.xlane.xlu0 %2621  ;;  %v2625_v16 = vpop.xlane.xlu1 %2624 }
0x1046   :  { %4273 = vpow2.f32 %v2642_v3  ;;  %v2632_v17 = vsub.f32 %v2594_v47, %v2622_v15  ;;  %v2633_v18 = vsub.f32 %v2599_v54, %v2625_v16 }
0x1047   :  { %v4785_v20 = vpop.eup %4265  ;;  %4275 = vpow2.f32 %v2644_v13 }
0x1048   :  { %v4268_v21 = vpop.eup %4267  ;;  %v2648_v63 = vmul.f32 1.442695, %v2633_v18  ;;  %v2653_v7 = vsel %vm1602_vm6, %v4785_v20, 0.0  ;;  %v2646_v19 = vmul.f32 1.442695, %v2632_v17  ;;  %v2863_v18 = vld [vmem:[#allocation2 + $0x260] sm:$0xff] }
0x1049   :  { %v4192_v1 = vpop.permute.xlu0 %4191  ;;  %2654 = vadd.xlane.f32.xlu1 %v2653_v7  ;;  %v2650_v4 = vsel %vm1602_vm6, %v4268_v21, 0.0  ;;  %v2866_v7 = vld [vmem:[#allocation2 + $0x278] sm:$0xff] }
0x104a   :  { %v4194_v22 = vunpack.i.h.bf16 %v4192_v1  ;;  %v4193_v23 = vunpack.i.l.bf16 %v4192_v1  ;;  %2651 = vadd.xlane.f32.xlu0 %v2650_v4  ;;  %4277 = vpow2.f32 %v2648_v63 }
0x104b   :  { %4279 = vpow2.f32 %v2646_v19 }
0x104c   :  { %v4790_v24 = vpop.eup %4269  ;;  %v4055_v27 = vpack.c.bf16 %v4194_v22, %v4193_v23 }
0x104d   :  { %v4792_v28 = vpop.eup %4271  ;;  %v2656_v30 = vsel %vm1602_vm6, %v4790_v24, 0.0 }
0x104e   :  { %4056 = vmatprep.subr.bf16.mxu0 %v4055_v27  ;;  %2657 = vadd.xlane.f32.xlu0 %v2656_v30  ;;  %v2659_v14 = vsel %vm1602_vm6, %v4792_v28, 0.0 }
0x104f   :  { %2660 = vadd.xlane.f32.xlu1 %v2659_v14  ;;  %4058 = vmatpush3.bf16.msra.mxu0 %v4055_v27 }
0x1050   :  { %v4274_v32 = vpop.eup %4273 }
0x1051   :  { %v4798_v34 = vpop.eup %4275  ;;  %v2662_v35 = vsel %vm1602_vm6, %v4274_v32, 0.0 }
0x1052   :  { %2663 = vadd.xlane.f32.xlu0 %v2662_v35  ;;  %v2665_v36 = vsel %vm1602_vm6, %v4798_v34, 0.0 }
0x1053   :  { %2666 = vadd.xlane.f32.xlu1 %v2665_v36 }
0x1054   :  { %v4803_v38 = vpop.eup %4277 }
0x1055   :  { %v2671_v42 = vsel %vm1602_vm6, %v4803_v38, 0.0  ;;  %v4280_v41 = vpop.eup %4279 }
0x1056   :  { %v2668_v39 = vsel %vm1602_vm6, %v4280_v41, 0.0 }
0x1057   :  { %2672 = vadd.xlane.f32.xlu1 %v2671_v42 }
0x105b   :  { %2669 = vadd.xlane.f32.xlu1 %v2668_v39  ;;  %v2868_v39 = vld [vmem:[#allocation2 + $0x288] sm:$0xff] }
0x1068   :  { %4201 = vrot.lane.b32.xlu0 %v4736_v8, %s4368_s0 }
0x106c   :  { %4196 = vrot.lane.b32.xlu1 %v4728_v57, %s4368_s0  ;;  %4206 = vrot.lane.b32.xlu0 %v4740_v11, %s4368_s0 }
0x10d6   :  { %v2655_v25 = vpop.xlane.xlu1 %2654 }
0x10d7   :  { %v2652_v45 = vpop.xlane.xlu0 %2651 }
0x10d8   :  { %4281 = vrcp.f32 %v2652_v45 }
0x10d9   :  { %4283 = vrcp.f32 %v2655_v25  ;;  %v2867_v25 = vld [vmem:[#allocation2 + $0x280] sm:$0xff] }
0x10db   :  { %v2658_v26 = vpop.xlane.xlu0 %2657 }
0x10dc   :  { %v2661_v52 = vpop.xlane.xlu1 %2660  ;;  %4285 = vrcp.f32 %v2658_v26 }
0x10dd   :  { %4287 = vrcp.f32 %v2661_v52 }
0x10df   :  { %v2664_v31 = vpop.xlane.xlu0 %2663 }
0x10e0   :  { %v2667_v29 = vpop.xlane.xlu1 %2666  ;;  %4289 = vrcp.f32 %v2664_v31  ;;  %v2869_v31 = vld [vmem:[#allocation2 + $0x290] sm:$0xff] }
0x10e1   :  { %4291 = vrcp.f32 %v2667_v29 }
0x10e2   :  { %v4282_v50 = vpop.eup %4281 }
0x10e3   :  { %v2682_v54 = vmul.f32 %v4282_v50, %v4268_v21  ;;  %v4202_v47 = vpop.permute.xlu0 %4201  ;;  %v4284_v61 = vpop.eup %4283  ;;  %v2865_v21 = vld [vmem:[#allocation2 + $0x270] sm:$0xff]  ;;  %v2870_v50 = vld [vmem:[#allocation2 + $0x298] sm:$0xff] }
0x10e4   :  { %v2673_v33 = vpop.xlane.xlu1 %2672  ;;  %v4204_v43 = vunpack.i.h.bf16 %v4202_v47  ;;  %v4203_v57 = vunpack.i.l.bf16 %v4202_v47  ;;  %v2683_v62 = vmul.f32 %v4284_v61, %v4785_v20  ;;  %v2864_v20 = vld [vmem:[#allocation2 + $0x268] sm:$0xff]  ;;  %v4075_v19 = vpack.c.bf16 %v2866_v7, %v2865_v21  ;;  %v3042_v21 = vld [vmem:[#allocation2 + $0x2f0] sm:$0xff] }
0x10e5   :  { %3886 = vmatprep.mubr.msk.f32.mxu0 %vm1602_vm6, %v2682_v54  ;;  %v4071_v63 = vpack.c.bf16 %v2864_v20, %v2863_v18  ;;  %v3041_v18 = vld [vmem:[#allocation2 + $0x2e8] sm:$0xff] }
0x10e6   :  { %v4063_v59 = vpack.c.bf16 %v4204_v43, %v4203_v57  ;;  %v4286_v56 = vpop.eup %4285 }
0x10e7   :  { %v4207_v11 = vpop.permute.xlu0 %4206  ;;  %v4288_v2 = vpop.eup %4287  ;;  %v2684_v5 = vmul.f32 %v4286_v56, %v4790_v24 }
0x10e8   :  { %v2670_v8 = vpop.xlane.xlu1 %2669  ;;  %v4209_v49 = vunpack.i.h.bf16 %v4207_v11  ;;  %v4208_v55 = vunpack.i.l.bf16 %v4207_v11  ;;  %v2685_v9 = vmul.f32 %v4288_v2, %v4792_v28 }
0x10e9   :  { %4293 = vrcp.f32 %v2670_v8 }
0x10ea   :  { %v4067_v60 = vpack.c.bf16 %v4209_v49, %v4208_v55  ;;  %4295 = vrcp.f32 %v2673_v33  ;;  %v4290_v6 = vpop.eup %4289 }
0x10eb   :  { %v4292_v10 = vpop.eup %4291  ;;  %v2686_v12 = vmul.f32 %v4290_v6, %v4274_v32 }
0x10ec   :  { %v4197_v51 = vpop.permute.xlu1 %4196  ;;  %v2687_v13 = vmul.f32 %v4292_v10, %v4798_v34 }
0x10ed   :  { %v4199_v44 = vunpack.i.h.bf16 %v4197_v51  ;;  %v4198_v58 = vunpack.i.l.bf16 %v4197_v51 }
0x10ef   :  { %v4059_v48 = vpack.c.bf16 %v4199_v44, %v4198_v58 }
0x10f1   :  { %4060 = vmatprep.subr.bf16.mxu0 %v4059_v48 }
0x10f2   :  { %4062 = vmatpush3.bf16.msra.mxu0 %v4059_v48 }
0x10f3   :  { %4064 = vmatprep.subr.bf16.mxu0 %v4063_v59  ;;  %v4294_v3 = vpop.eup %4293 }
0x10f4   :  { %v4296_v15 = vpop.eup %4295  ;;  %v2688_v16 = vmul.f32 %v4294_v3, %v4280_v41 }
0x10f5   :  { %v2689_v17 = vmul.f32 %v4296_v15, %v4803_v38 }
0x10f6   :  { %4066 = vmatpush3.bf16.msra.mxu0 %v4063_v59 }
0x10f7   :  { %4068 = vmatprep.subr.bf16.mxu0 %v4067_v60 }
0x10fa   :  { %4070 = vmatpush3.bf16.msra.mxu0 %v4067_v60 }
0x10fb   :  { %4072 = vmatprep.subr.bf16.mxu0 %v4071_v63 }
0x10fd   :  { %3887 = vmatmul.mubr.msk.f32.vlgmr.msra.gmra.mrb[38].mxu0 %vm1602_vm6, %v2683_v62 }
0x10fe   :  { %3889 = vmatprep.mubr.msk.f32.mxu0 %vm1602_vm6, %v2684_v5  ;;  %4074 = vmatpush3.bf16.msra.mxu0 %v4071_v63  ;;  %v3043_v63 = vld [vmem:[#allocation2 + $0x2f8] sm:$0xff] }
0x10ff   :  { %4076 = vmatprep.subr.bf16.mxu0 %v4075_v19  ;;  %v4083_v7 = vpack.c.bf16 %v3043_v63, %v3042_v21 }
0x1101   :  { %3890 = vmatmul.mubr.msk.f32.gmra.mrb[40].mxu0 %vm1602_vm6, %v2685_v9 }
0x1102   :  { %3892 = vmatprep.mubr.msk.f32.mxu0 %vm1602_vm6, %v2686_v12  ;;  %4078 = vmatpush3.bf16.msra.mxu0 %v4075_v19  ;;  %v3149_v19 = vld [vmem:[#allocation2 + $0x320] sm:$0xff] }
0x1105   :  { %3893 = vmatmul.mubr.msk.f32.gmra.mrb[42].mxu0 %vm1602_vm6, %v2687_v13 }
0x1106   :  { %3895 = vmatprep.mubr.msk.f32.mxu0 %vm1602_vm6, %v2688_v16 }
0x1109   :  { %3896 = vmatmul.mubr.msk.f32.gmra.mrb[44].mxu0 %vm1602_vm6, %v2689_v17  ;;  %v3040_v17 = vld [vmem:[#allocation2 + $0x2e0] sm:$0xff] }
0x110a   :  { %v4079_v20 = vpack.c.bf16 %v3041_v18, %v3040_v17  ;;  %v3154_v18 = vld [vmem:[#allocation2 + $0x348] sm:$0xff] }
0x110c   :  { %4080 = vmatprep.subr.bf16.mxu0 %v4079_v20 }
0x11d0   :  { %v3888_v1 = vpop.f32.mrb[38].mxu0 }
0x11d1   :  { %v2804_v4 = vpop.f32.mrb[39].mxu0 }
0x11d4   :  { %v3891_v22 = vpop.f32.mrb[40].mxu0 }
0x11d5   :  { %v2814_v23 = vpop.f32.mrb[41].mxu0 }
0x11d8   :  { %v3894_v24 = vpop.f32.mrb[42].mxu0 }
0x11d9   :  { %2849 = vrot.lane.b32.xlu0 %v3894_v24, %s4369_s12  ;;  %v2824_v27 = vpop.f32.mrb[43].mxu0 }
0x11da   :  { %2847 = vrot.lane.b32.xlu1 %v2824_v27, %s4369_s12 }
0x11dc   :  { %v3897_v28 = vpop.f32.mrb[44].mxu0 }
0x11dd   :  { %2853 = vrot.lane.b32.xlu0 %v3897_v28, %s4369_s12  ;;  %v2834_v30 = vpop.f32.mrb[45].mxu0 }
0x11de   :  { %2851 = vrot.lane.b32.xlu1 %v2834_v30, %s4369_s12 }
0x124b   :  { %v2850_v14 = vpop.permute.xlu0 %2849 }
0x124c   :  { %v2848_v32 = vpop.permute.xlu1 %2847  ;;  %v2860_v35 = vsel %vm1464_vm4, %v3888_v1, %v2850_v14  ;;  %v3150_v1 = vld [vmem:[#allocation2 + $0x328] sm:$0xff] }
0x124d   :  { %v2859_v34 = vsel %vm1464_vm4, %v2804_v4, %v2848_v32  ;;  %v3151_v4 = vld [vmem:[#allocation2 + $0x330] sm:$0xff] }
0x124e   :  { %3906 = vmatprep.mubr.msk.f32.mxu0 %vm1338_vm3, %v2859_v34 }
0x124f   :  { %3907 = vmatmul.mubr.msk.f32.vlgmr.msra.gmra.mrb[46].mxu0 %vm1338_vm3, %v2860_v35  ;;  %v2854_v36 = vpop.permute.xlu0 %2853 }
0x1250   :  { %v2852_v38 = vpop.permute.xlu1 %2851  ;;  %v2862_v41 = vsel %vm1464_vm4, %v3891_v22, %v2854_v36  ;;  %4082 = vmatpush3.bf16.msra.mxu0 %v4079_v20  ;;  %v4087_v22 = vpack.c.bf16 %v3150_v1, %v3149_v19  ;;  %v3153_v20 = vld [vmem:[#allocation2 + $0x340] sm:$0xff]  ;;  %v3156_v1 = vld [vmem:[#allocation2 + $0x358] sm:$0xff] }
0x1251   :  { %v2861_v42 = vsel %vm1464_vm4, %v2814_v23, %v2852_v38  ;;  %4084 = vmatprep.subr.bf16.mxu0 %v4083_v7  ;;  %v3152_v23 = vld [vmem:[#allocation2 + $0x338] sm:$0xff] }
0x1252   :  { %3909 = vmatprep.mubr.msk.f32.mxu0 %vm1338_vm3, %v2861_v42  ;;  %v4091_v24 = vpack.c.bf16 %v3152_v23, %v3151_v4  ;;  %4088 = vmatprep.subr.bf16.mxu1 %v4087_v22 }
0x1253   :  { %3910 = vmatmul.mubr.msk.f32.gmra.mrb[48].mxu0 %vm1338_vm3, %v2862_v41  ;;  %4090 = vmatpush3.bf16.msra.mxu1 %v4087_v22  ;;  %v3155_v22 = vld [vmem:[#allocation2 + $0x350] sm:$0xff] }
0x1254   :  { %4086 = vmatpush3.bf16.msra.mxu0 %v4083_v7  ;;  %4092 = vmatprep.subr.bf16.mxu1 %v4091_v24 }
0x1257   :  { %4094 = vmatpush3.bf16.msra.mxu1 %v4091_v24 }
0x1322   :  { %v3908_v45 = vpop.f32.mrb[46].mxu0 }
0x1323   :  { %v2955_v26 = vadd.f32 %v3908_v45, %v2868_v39  ;;  %v2949_v52 = vpop.f32.mrb[47].mxu0  ;;  %v2973_v45 = vld [vmem:[#allocation2 + $0x2a8] sm:$0xff] }
0x1324   :  { %v2950_v29 = vadd.f32 %v2949_v52, %v2867_v25 }
0x1325   :  { %v2969_v54 = vadd.f32 %v2955_v26, %v4709_v37 }
0x1326   :  { %v3911_v33 = vpop.f32.mrb[48].mxu0  ;;  %v2968_v47 = vadd.f32 %v2950_v29, %v4707_v40  ;;  %v2972_v29 = vld [vmem:[#allocation2 + $0x2a0] sm:$0xff] }
0x1327   :  { %v2965_v8 = vadd.f32 %v3911_v33, %v2870_v50  ;;  %v2959_v51 = vpop.f32.mrb[49].mxu0  ;;  %v2983_v43 = vsel %vm1338_vm3, %v2969_v54, 0.0  ;;  %v2977_v33 = vld [vmem:[#allocation2 + $0x2c8] sm:$0xff] }
0x1328   :  { %v2960_v57 = vadd.f32 %v2959_v51, %v2869_v31  ;;  %2984 = vadd.xlane.f32.xlu0 %v2983_v43  ;;  %v2980_v44 = vsel %vm1338_vm3, %v2968_v47, 0.0  ;;  %v2974_v51 = vld [vmem:[#allocation2 + $0x2b0] sm:$0xff] }
0x1329   :  { %2981 = vadd.xlane.f32.xlu1 %v2980_v44  ;;  %v2971_v58 = vadd.f32 %v2965_v8, %v4717_v46 }
0x132a   :  { %v2970_v11 = vadd.f32 %v2960_v57, %v4715_v53 }
0x132b   :  { %v2989_v48 = vsel %vm1338_vm3, %v2971_v58, 0.0 }
0x132c   :  { %v2986_v37 = vsel %vm1338_vm3, %v2970_v11, 0.0 }
0x132d   :  { %2987 = vadd.xlane.f32.xlu0 %v2986_v37  ;;  %2990 = vadd.xlane.f32.xlu1 %v2989_v48  ;;  %v2978_v48 = vld [vmem:[#allocation2 + $0x2d0] sm:$0xff] }
0x13b5   :  { %v2985_v40 = vpop.xlane.xlu0 %2984 }
0x13b6   :  { %v2993_v59 = vmul.f32 0.03125, %v2985_v40  ;;  %v2982_v49 = vpop.xlane.xlu1 %2981 }
0x13b7   :  { %v2992_v55 = vmul.f32 0.03125, %v2982_v49 }
0x13b8   :  { %v2997_v60 = vsub.f32 %v2969_v54, %v2993_v59  ;;  %v2976_v54 = vld [vmem:[#allocation2 + $0x2c0] sm:$0xff]  ;;  %v2979_v59 = vld [vmem:[#allocation2 + $0x2d8] sm:$0xff] }
0x13b9   :  { %v2996_v61 = vsub.f32 %v2968_v47, %v2992_v55 }
0x13ba   :  { %v2988_v56 = vpop.xlane.xlu0 %2987  ;;  %v2991_v62 = vpop.xlane.xlu1 %2990  ;;  %v3001_v2 = vmul.f32 %v2997_v60, %v2997_v60 }
0x13bb   :  { %v2994_v5 = vmul.f32 0.03125, %v2988_v56  ;;  %v2995_v6 = vmul.f32 0.03125, %v2991_v62  ;;  %v3000_v46 = vmul.f32 %v2996_v61, %v2996_v61  ;;  %v3044_v56 = vld [vmem:[#allocation2 + $0x300] sm:$0xff] }
0x13bc   :  { %v3007_v53 = vsel %vm1338_vm3, %v3001_v2, 0.0 }
0x13bd   :  { %v2998_v9 = vsub.f32 %v2970_v11, %v2994_v5  ;;  %v4848_v10 = vsub.f32 %v2971_v58, %v2995_v6  ;;  %3008 = vadd.xlane.f32.xlu1 %v3007_v53  ;;  %v3004_v12 = vsel %vm1338_vm3, %v3000_v46, 0.0  ;;  %v2975_v58 = vld [vmem:[#allocation2 + $0x2b8] sm:$0xff]  ;;  %v3046_v53 = vld [vmem:[#allocation2 + $0x310] sm:$0xff] }
0x13be   :  { %3005 = vadd.xlane.f32.xlu0 %v3004_v12  ;;  %v3047_v46 = vld [vmem:[#allocation2 + $0x318] sm:$0xff] }
0x13bf   :  { %v3002_v3 = vmul.f32 %v2998_v9, %v2998_v9  ;;  %v3003_v13 = vmul.f32 %v4848_v10, %v4848_v10 }
0x13c1   :  { %v3010_v15 = vsel %vm1338_vm3, %v3002_v3, 0.0  ;;  %v3013_v16 = vsel %vm1338_vm3, %v3003_v13, 0.0 }
0x13c2   :  { %3011 = vadd.xlane.f32.xlu0 %v3010_v15  ;;  %3014 = vadd.xlane.f32.xlu1 %v3013_v16 }
0x144a   :  { %v3009_v27 = vpop.xlane.xlu1 %3008 }
0x144b   :  { %v3017_v28 = vmul.f32 0.03125, %v3009_v27  ;;  %v3006_v30 = vpop.xlane.xlu0 %3005 }
0x144c   :  { %v3016_v14 = vmul.f32 0.03125, %v3006_v30 }
0x144d   :  { %v3021_v32 = vadd.f32 1e-05, %v3017_v28 }
0x144e   :  { %v3020_v34 = vadd.f32 1e-05, %v3016_v14 }
0x144f   :  { %4297 = vrsqrt.f32 %v3021_v32  ;;  %v3012_v35 = vpop.xlane.xlu0 %3011  ;;  %v3015_v36 = vpop.xlane.xlu1 %3014 }
0x1450   :  { %4299 = vrsqrt.f32 %v3020_v34  ;;  %v3018_v38 = vmul.f32 0.03125, %v3012_v35  ;;  %v3019_v42 = vmul.f32 0.03125, %v3015_v36 }
0x1452   :  { %v3022_v41 = vadd.f32 1e-05, %v3018_v38  ;;  %v3023_v39 = vadd.f32 1e-05, %v3019_v42 }
0x1454   :  { %4301 = vrsqrt.f32 %v3022_v41 }
0x1455   :  { %4303 = vrsqrt.f32 %v3023_v39 }
0x1459   :  { %v4298_v25 = vpop.eup %4297 }
0x145a   :  { %v4300_v26 = vpop.eup %4299  ;;  %v3029_v52 = vmul.f32 %v4298_v25, %v2997_v60 }
0x145b   :  { %v3028_v50 = vmul.f32 %v4300_v26, %v2996_v61  ;;  %v3045_v61 = vld [vmem:[#allocation2 + $0x308] sm:$0xff] }
0x145c   :  { %v3033_v31 = vmul.f32 %v3029_v52, %v2973_v45 }
0x145d   :  { %v3032_v47 = vmul.f32 %v3028_v50, %v2972_v29 }
0x145e   :  { %v4302_v8 = vpop.eup %4301  ;;  %v3037_v11 = vadd.f32 %v3033_v31, %v2977_v33 }
0x145f   :  { %v4304_v43 = vpop.eup %4303  ;;  %v3036_v57 = vadd.f32 %v3032_v47, %v2976_v54  ;;  %v3030_v44 = vmul.f32 %v4302_v8, %v2998_v9 }
0x1460   :  { %v3031_v37 = vmul.f32 %v4304_v43, %v4848_v10 }
0x1461   :  { %3920 = vmatprep.mubr.msk.f32.mxu0 %vm1338_vm3, %v3036_v57  ;;  %v3034_v40 = vmul.f32 %v3030_v44, %v2974_v51 }
0x1462   :  { %3921 = vmatmul.mubr.msk.f32.vlgmr.msra.gmra.mrb[50].mxu0 %vm1338_vm3, %v3037_v11  ;;  %v3035_v49 = vmul.f32 %v3031_v37, %v2975_v58 }
0x1463   :  { %v3038_v55 = vadd.f32 %v3034_v40, %v2978_v48 }
0x1464   :  { %v3039_v60 = vadd.f32 %v3035_v49, %v2979_v59  ;;  %v3353_v49 = vld [vmem:[#allocation2 + $0x78] sm:$0xff] }
0x1465   :  { %3923 = vmatprep.mubr.msk.f32.mxu0 %vm1338_vm3, %v3038_v55 }
0x1466   :  { %3924 = vmatmul.mubr.msk.f32.gmra.mrb[52].mxu0 %vm1338_vm3, %v3039_v60 }
0x1467   :  { %3948 = vmatprep.mubr.msk.f32.mxu0 %vm4371_vm7, %v4364_v0 }
0x1535   :  { %v3922_v62 = vpop.f32.mrb[50].mxu0 }
0x1536   :  { %v3132_v2 = vadd.f32 %v3922_v62, %v3045_v61  ;;  %v3126_v5 = vpop.f32.mrb[51].mxu0  ;;  %v4370_v61 = vmov 0.0|0.0   ;;  %v3356_v62 = vld [vmem:[#allocation2 + $0x90] sm:$0xff] }
0x1537   :  { %v3127_v6 = vadd.f32 %v3126_v5, %v3044_v56  ;;  %4095 = vmatprep.subr.bf16.mxu0 %v4370_v61 }
0x1538   :  { %v3146_v12 = vmax.f32 %v3132_v2, 0.0 }
0x1539   :  { %v3145_v9 = vmax.f32 %v3127_v6, 0.0  ;;  %v3925_v10 = vpop.f32.mrb[52].mxu0 }
0x153a   :  { %v3142_v3 = vadd.f32 %v3925_v10, %v3047_v46  ;;  %v3136_v13 = vpop.f32.mrb[53].mxu0 }
0x153b   :  { %v3137_v15 = vadd.f32 %v3136_v13, %v3046_v53  ;;  %3934 = vmatprep.mubr.msk.f32.mxu1 %vm1338_vm3, %v3145_v9 }
0x153c   :  { %3935 = vmatmul.mubr.msk.f32.vlgmr.msra.gmra.mrb[36].mxu1 %vm1338_vm3, %v3146_v12  ;;  %v3148_v17 = vmax.f32 %v3142_v3, 0.0 }
0x153d   :  { %v3147_v16 = vmax.f32 %v3137_v15, 0.0 }
0x153f   :  { %3937 = vmatprep.mubr.msk.f32.mxu1 %vm1338_vm3, %v3147_v16 }
0x1540   :  { %3938 = vmatmul.mubr.msk.f32.gmra.mrb[38].mxu1 %vm1338_vm3, %v3148_v17 }
0x160f   :  { %v3936_v21 = vpop.f32.mrb[36].mxu1 }
0x1610   :  { %v3241_v63 = vadd.f32 %v3936_v21, %v3154_v18  ;;  %v3235_v7 = vpop.f32.mrb[37].mxu1  ;;  %v3263_v18 = vld [vmem:[#allocation2 + $0x368] sm:$0xff] }
0x1611   :  { %v3236_v19 = vadd.f32 %v3235_v7, %v3153_v20  ;;  %v3267_v7 = vld [vmem:[#allocation2 + $0x388] sm:$0xff] }
0x1612   :  { %v3255_v4 = vmax.f32 %v3241_v63, 0.0  ;;  %v3262_v63 = vld [vmem:[#allocation2 + $0x360] sm:$0xff] }
0x1613   :  { %v3254_v23 = vmax.f32 %v3236_v19, 0.0  ;;  %v3939_v24 = vpop.f32.mrb[38].mxu1 }
0x1614   :  { %v3251_v27 = vadd.f32 %v3939_v24, %v3156_v1  ;;  %v3245_v28 = vpop.f32.mrb[39].mxu1  ;;  %v3259_v30 = vadd.f32 %v3255_v4, %v3037_v11  ;;  %v3266_v4 = vld [vmem:[#allocation2 + $0x380] sm:$0xff]  ;;  %v3265_v24 = vld [vmem:[#allocation2 + $0x378] sm:$0xff] }
0x1615   :  { %v3246_v14 = vadd.f32 %v3245_v28, %v3155_v22  ;;  %v3258_v32 = vadd.f32 %v3254_v23, %v3036_v57 }
0x1616   :  { %v3257_v34 = vmax.f32 %v3251_v27, 0.0  ;;  %v3273_v35 = vsel %vm1338_vm3, %v3259_v30, 0.0 }
0x1617   :  { %v3256_v36 = vmax.f32 %v3246_v14, 0.0  ;;  %3274 = vadd.xlane.f32.xlu1 %v3273_v35  ;;  %v3270_v38 = vsel %vm1338_vm3, %v3258_v32, 0.0  ;;  %v3264_v14 = vld [vmem:[#allocation2 + $0x370] sm:$0xff] }
0x1618   :  { %3271 = vadd.xlane.f32.xlu0 %v3270_v38  ;;  %v3261_v42 = vadd.f32 %v3257_v34, %v3039_v60  ;;  %v3355_v60 = vld [vmem:[#allocation2 + $0x88] sm:$0xff]  ;;  %v3269_v34 = vld [vmem:[#allocation2 + $0x398] sm:$0xff] }
0x1619   :  { %v3260_v41 = vadd.f32 %v3256_v36, %v3038_v55  ;;  %v3354_v55 = vld [vmem:[#allocation2 + $0x80] sm:$0xff]  ;;  %v4099_v2 = vpack.c.bf16 %v3356_v62, %v3355_v60 }
0x161a   :  { %v3279_v39 = vsel %vm1338_vm3, %v3261_v42, 0.0  ;;  %v4096_v56 = vpack.c.bf16 %v3354_v55, %v3353_v49  ;;  %v3357_v49 = vld [vmem:[#allocation2 + $0x98] sm:$0x3] }
0x161b   :  { %3280 = vadd.xlane.f32.xlu1 %v3279_v39  ;;  %v3276_v25 = vsel %vm1338_vm3, %v3260_v41, 0.0 }
0x161c   :  { %3277 = vadd.xlane.f32.xlu0 %v3276_v25  ;;  %4097 = vmatpush3.bf16.msra.mxu0 %v4096_v56 }
0x161d   :  { %4098 = vmatprep.subr.bf16.mxu0 %v4370_v61 }
0x1620   :  { %4100 = vmatpush3.bf16.msra.mxu0 %v4099_v2 }
0x16a4   :  { %v3275_v45 = vpop.xlane.xlu1 %3274 }
0x16a5   :  { %v3283_v26 = vmul.f32 0.03125, %v3275_v45  ;;  %v3272_v52 = vpop.xlane.xlu0 %3271 }
0x16a6   :  { %v3282_v29 = vmul.f32 0.03125, %v3272_v52 }
0x16a7   :  { %v3287_v50 = vsub.f32 %v3259_v30, %v3283_v26 }
0x16a8   :  { %v3286_v31 = vsub.f32 %v3258_v32, %v3282_v29  ;;  %v3281_v54 = vpop.xlane.xlu1 %3280 }
0x16a9   :  { %v3285_v33 = vmul.f32 0.03125, %v3281_v54  ;;  %v3278_v47 = vpop.xlane.xlu0 %3277  ;;  %v3291_v8 = vmul.f32 %v3287_v50, %v3287_v50 }
0x16aa   :  { %v3284_v51 = vmul.f32 0.03125, %v3278_v47  ;;  %v3290_v43 = vmul.f32 %v3286_v31, %v3286_v31 }
0x16ab   :  { %v3289_v57 = vsub.f32 %v3261_v42, %v3285_v33  ;;  %v3297_v44 = vsel %vm1338_vm3, %v3291_v8, 0.0  ;;  %v3268_v42 = vld [vmem:[#allocation2 + $0x390] sm:$0xff] }
0x16ac   :  { %v3288_v58 = vsub.f32 %v3260_v41, %v3284_v51  ;;  %3298 = vadd.xlane.f32.xlu1 %v3297_v44  ;;  %v3294_v11 = vsel %vm1338_vm3, %v3290_v43, 0.0 }
0x16ad   :  { %3295 = vadd.xlane.f32.xlu0 %v3294_v11  ;;  %v3293_v48 = vmul.f32 %v3289_v57, %v3289_v57 }
0x16ae   :  { %v3292_v37 = vmul.f32 %v3288_v58, %v3288_v58 }
0x16af   :  { %v3303_v40 = vsel %vm1338_vm3, %v3293_v48, 0.0 }
0x16b0   :  { %3304 = vadd.xlane.f32.xlu1 %v3303_v40  ;;  %v3300_v59 = vsel %vm1338_vm3, %v3292_v37, 0.0 }
0x16b1   :  { %3301 = vadd.xlane.f32.xlu0 %v3300_v59 }
0x1739   :  { %v3299_v5 = vpop.xlane.xlu1 %3298 }
0x173a   :  { %v3307_v6 = vmul.f32 0.03125, %v3299_v5  ;;  %v3296_v46 = vpop.xlane.xlu0 %3295 }
0x173b   :  { %v3306_v53 = vmul.f32 0.03125, %v3296_v46 }
0x173c   :  { %v3311_v9 = vadd.f32 1e-05, %v3307_v6 }
0x173d   :  { %v3310_v10 = vadd.f32 1e-05, %v3306_v53  ;;  %v3305_v12 = vpop.xlane.xlu1 %3304 }
0x173e   :  { %4305 = vrsqrt.f32 %v3311_v9  ;;  %v3309_v3 = vmul.f32 0.03125, %v3305_v12  ;;  %v3302_v13 = vpop.xlane.xlu0 %3301 }
0x173f   :  { %4307 = vrsqrt.f32 %v3310_v10  ;;  %v3308_v15 = vmul.f32 0.03125, %v3302_v13 }
0x1740   :  { %v3313_v16 = vadd.f32 1e-05, %v3309_v3 }
0x1741   :  { %v3312_v17 = vadd.f32 1e-05, %v3308_v15 }
0x1742   :  { %4309 = vrsqrt.f32 %v3313_v16 }
0x1743   :  { %4311 = vrsqrt.f32 %v3312_v17 }
0x1748   :  { %v4306_v0 = vpop.eup %4305 }
0x1749   :  { %v4308_v20 = vpop.eup %4307  ;;  %v3319_v21 = vmul.f32 %v4306_v0, %v3287_v50 }
0x174a   :  { %v3318_v19 = vmul.f32 %v4308_v20, %v3286_v31 }
0x174b   :  { %v3323_v1 = vmul.f32 %v3319_v21, %v3263_v18 }
0x174c   :  { %v4310_v22 = vpop.eup %4309  ;;  %v3322_v23 = vmul.f32 %v3318_v19, %v3262_v63 }
0x174d   :  { %v4312_v27 = vpop.eup %4311  ;;  %v3327_v28 = vadd.f32 %v3323_v1, %v3267_v7  ;;  %v3321_v30 = vmul.f32 %v4310_v22, %v3289_v57 }
0x174e   :  { %v3326_v32 = vadd.f32 %v3322_v23, %v3266_v4  ;;  %v3320_v35 = vmul.f32 %v4312_v27, %v3288_v58 }
0x174f   :  { %v3331_v36 = vsel %vm1338_vm3, %v3327_v28, 0.0  ;;  %v3325_v38 = vmul.f32 %v3321_v30, %v3265_v24 }
0x1750   :  { %v3330_v41 = vsel %vm1338_vm3, %v3326_v32, 0.0  ;;  %v3324_v39 = vmul.f32 %v3320_v35, %v3264_v14 }
0x1751   :  { %v3329_v25 = vadd.f32 %v3325_v38, %v3269_v34  ;;  %v3332_v45 = vadd.f32 %v3331_v36, %v3330_v41 }
0x1752   :  { %v3328_v26 = vadd.f32 %v3324_v39, %v3268_v42 }
0x1753   :  { %v3342_v52 = vsel %vm1338_vm3, %v3329_v25, 0.0  ;;  %v3333_v29 = vrot.slane %v3332_v45, 4 }
0x1754   :  { %v3341_v50 = vsel %vm1338_vm3, %v3328_v26, 0.0 }
0x1755   :  { %v3343_v31 = vadd.f32 %v3342_v52, %v3341_v50  ;;  %v3334_v54 = vadd.f32 %v3333_v29, %v3332_v45 }
0x1757   :  { %v3335_v33 = vrot.slane %v3334_v54, 2  ;;  %v3344_v47 = vrot.slane %v3343_v31, 4 }
0x1759   :  { %v3336_v8 = vadd.f32 %v3335_v33, %v3334_v54  ;;  %v3345_v51 = vadd.f32 %v3344_v47, %v3343_v31 }
0x175b   :  { %v3337_v43 = vrot.slane %v3336_v8, 1  ;;  %v3346_v57 = vrot.slane %v3345_v51, 2 }
0x175d   :  { %v3347_v44 = vadd.f32 %v3346_v57, %v3345_v51  ;;  %v3338_v58 = vadd.f32 %v3337_v43, %v3336_v8 }
0x175f   :  { %v3348_v11 = vrot.slane %v3347_v44, 1  ;;  %v3340_v37 = vmul.f32 0.0625, %v3338_v58 }
0x1761   :  { %v3349_v48 = vadd.f32 %v3348_v11, %v3347_v44 }
0x1763   :  { %v3350_v40 = vmul.f32 0.0625, %v3349_v48 }
0x1765   :  { %v3352_v59 = vsel %vm3351_vm8, %v3340_v37, %v3350_v40 }
0x1766   :  { %3949 = vmatmul.mubr.msk.f32.vlgmr.msra.gmra.mrb[54].mxu0 %vm1338_vm3, %v3352_v59 }
0x1839   :  { %v3427_v55 = vpop.f32.mrb[54].mxu0 }
0x183a   :  { %v3428_v60 = vadd.f32 %v3427_v55, %v3357_v49  ;;  %v3950_v61 = vpop.f32.mrb[55].mxu0 }
0x183c   :  { %v3431_v56 = vmax.f32 %v3428_v60, 0.0 }
0x183e   :  { %3432 = vst [vmem:[#allocation5] sm:$0x3] %v3431_v56 }
0x183f   :  { %4346 = shalt.err (!%p4343_p12)
}
0x1840   :  { %s4347_s18 = scalar_lea.hbm %s4893_s3, 32 }
0x1841   :  { %p4348_p13 = scmp.ne.s32.totalorder %s4893_s3, %s4347_s18  ;;  %p4351_p0 = scmp.lt.u32.totalorder %s4347_s18, %s4893_s3 }
0x1843   :  { %p4353_p1 = pnand %p4351_p0, %p4348_p13 }
0x1845   :  { %4356 = shalt.err (!%p4353_p1)
}
0x1846   :  { %3442 = dma.vmem_to_hbm [thread:$0]  %s3440_s14, 32, %s4893_s3, [#allocation4]  }
0x1847   :  { %4359 = dma.done.wait [#allocation4], 32  }
0x1848   :  { %4360 = vsyncadd [#allocation4], 4294967264 }
0x1849   :  { %3446 = vsyncpa [#allocation3], 1 }
0x184a   :  { %3447 = vsyncpa [#allocation4], 1 }

</bundles_post_ra>
